<compile_context>
chip_gen: v7x
topology: tpu7x:2x2x1
jax: 0.10.0
libtpu: 0.0.40
codegen_flags: <defaults>
</compile_context>

<pallas_src>
import functools
import math

import jax
import jax.numpy as jnp
from jax.experimental import pallas as pl
from jax.experimental.pallas import tpu as pltpu

EPS = 1e-6  # Norm() eps in the reference code


def _norm(x, alpha, bias, d):
    # Reference Norm: alpha * (x - mean) / (std + eps) + bias, torch unbiased std.
    mean = jnp.mean(x, axis=-1, keepdims=True)
    centered = x - mean
    var = jnp.sum(centered * centered, axis=-1, keepdims=True) * (1.0 / (d - 1))
    return alpha * (centered / (jnp.sqrt(var) + EPS)) + bias


def fused_encoder_kernel(heads, B, S,
                         x_ref, wqkv_ref, bqkv_ref, wo_ref, w1_ref, w2_ref,
                         c1_ref, small_ref, nh_ref, wout_ref, bout_ref,
                         o_ref, xs_ref):
    """One encoder layer per grid step; x carried in VMEM scratch across layers.

    Per-layer weights arrive as single lane-dense bf16 blocks:
      wqkv: (D, 3D)  wo: (D, D)  w1: (D, d_ff)  w2: (d_ff, D)
    small_ref (f32, (6, D)) rows: [a1, b1, a2, b2, bo, c2].
    """
    l = pl.program_id(0)
    D = xs_ref.shape[-1]
    dk = D // heads
    bf = jnp.bfloat16

    @pl.when(l == 0)
    def _():
        xs_ref[...] = x_ref[...]

    x = xs_ref[...]                                      # (B*S, D) f32

    a1 = small_ref[0:1, :]
    b1 = small_ref[1:2, :]
    a2 = small_ref[2:3, :]
    b2 = small_ref[3:4, :]
    bo = small_ref[4:5, :]
    c2 = small_ref[5:6, :]

    # ---- sublayer 1: x = x + MHA(norm_1(x)) --------------------------------
    x2 = _norm(x, a1, b1, D)
    # single fused QKV projection (1/sqrt(dk) already folded into Wq/bq)
    qkv = (jnp.dot(x2.astype(bf), wqkv_ref[...],
                   preferred_element_type=jnp.float32) + bqkv_ref[...])   # (B*S, 3D)

    head_outs = []
    for h in range(heads):                               # tiny SxS work only
        q = qkv[:, h * dk:(h + 1) * dk].reshape(B, S, dk).astype(bf)
        k = qkv[:, D + h * dk:D + (h + 1) * dk].reshape(B, S, dk).astype(bf)
        v = qkv[:, 2 * D + h * dk:2 * D + (h + 1) * dk].reshape(B, S, dk).astype(bf)
        s = jnp.einsum('bqd,bkd->bqk', q, k, preferred_element_type=jnp.float32)
        # mask is None in this configuration -> plain softmax
        s = s - jnp.max(s, axis=-1, keepdims=True)
        p = jnp.exp(s)
        p = p * pl.reciprocal(jnp.sum(p, axis=-1, keepdims=True), approx=True)
        oh = jnp.einsum('bqk,bkd->bqd', p.astype(bf), v,
                        preferred_element_type=jnp.float32)
        head_outs.append(oh.reshape(B * S, dk))

    heads_cat = jnp.concatenate(head_outs, axis=-1).astype(bf)            # (B*S, D)
    attn = jnp.dot(heads_cat, wo_ref[...],
                   preferred_element_type=jnp.float32) + bo
    x = x + attn

    # ---- sublayer 2: x = x + FF(norm_2(x)) ---------------------------------
    x2 = _norm(x, a2, b2, D)
    h1 = jnp.dot(x2.astype(bf), w1_ref[...],
                 preferred_element_type=jnp.float32) + c1_ref[...]
    h1 = jnp.maximum(h1, 0.0)
    ff = jnp.dot(h1.astype(bf), w2_ref[...],
                 preferred_element_type=jnp.float32) + c2
    x = x + ff
    xs_ref[...] = x

    # ---- head (last layer only): Norm of token 0, then padded classifier ---
    @pl.when(l == pl.num_programs(0) - 1)
    def _():
        x0 = x.reshape(B, S, D)[:, 0, :]                 # (B, D); row-split reshape only
        x0n = _norm(x0, nh_ref[0:1, :], nh_ref[1:2, :], D)
        o_ref[...] = (jnp.dot(x0n.astype(bf), wout_ref[...],
                              preferred_element_type=jnp.float32)
                      + bout_ref[...]).astype(o_ref.dtype)


def positional_encoding(seq_len, d_model):
    # Reference PositionalEncoder table (Lynn-Evans tutorial formula).
    pos = jnp.arange(seq_len, dtype=jnp.float32)[:, None]
    i = jnp.arange(0, d_model, 2, dtype=jnp.float32)[None, :]
    pe_sin = jnp.sin(pos / jnp.power(10000.0, (2.0 * i) / d_model))
    pe_cos = jnp.cos(pos / jnp.power(10000.0, (2.0 * (i + 1.0)) / d_model))
    return jnp.stack([pe_sin, pe_cos], axis=-1).reshape(seq_len, d_model)


def init_params(key, vocab, d_model, d_ff, class_num, n_layers):
    def nrm(k, shape, scale=0.02):
        return scale * jax.random.normal(k, shape, jnp.float32)

    # 1 (embed) + 12 per layer + 2 (classifier) random tensors.
    keys = jax.random.split(key, 3 + 12 * n_layers)
    it = iter(keys)
    params = {
        # sqrt(d_model) scale from PositionalEncoder folded into the table.
        "embed_scaled": nrm(next(it), (vocab, d_model)) * math.sqrt(d_model)
    }
    layers = []
    for _ in range(n_layers):
        layers.append((
            jnp.ones((1, d_model), jnp.float32),   # norm_1 alpha
            jnp.zeros((1, d_model), jnp.float32),  # norm_1 bias
            nrm(next(it), (d_model, d_model)),     # Wq (in,out) == torch W.T
            nrm(next(it), (1, d_model)),           # bq
            nrm(next(it), (d_model, d_model)),     # Wk
            nrm(next(it), (1, d_model)),           # bk
            nrm(next(it), (d_model, d_model)),     # Wv
            nrm(next(it), (1, d_model)),           # bv
            nrm(next(it), (d_model, d_model)),     # Wo
            nrm(next(it), (1, d_model)),           # bo
            jnp.ones((1, d_model), jnp.float32),   # norm_2 alpha
            jnp.zeros((1, d_model), jnp.float32),  # norm_2 bias
            nrm(next(it), (d_model, d_ff)),        # FF W1
            nrm(next(it), (1, d_ff)),              # FF b1
            nrm(next(it), (d_ff, d_model)),        # FF W2
            nrm(next(it), (1, d_model)),           # FF b2
        ))
    params["layers"] = layers
    params["norm_alpha"] = jnp.ones((1, d_model), jnp.float32)
    params["norm_bias"] = jnp.zeros((1, d_model), jnp.float32)
    params["w_out"] = nrm(next(it), (d_model, class_num))
    params["b_out"] = nrm(next(it), (1, class_num))
    return params


def pack_params(params, heads, out_pad):
    """One-time host-side repack: stack layers, fuse QKV, fold 1/sqrt(dk) into
    Wq/bq, store matmul weights in bf16, pack tiny per-layer params into one
    (L, 6, D) slab, and zero-pad the classifier to a lane-dense 128-wide output."""
    wqkv_l, bqkv_l, wo_l, w1_l, w2_l, c1_l, small_l = [], [], [], [], [], [], []
    for lp in params["layers"]:
        (a1, b1, wq, bq, wk, bk, wv, bv, wo, bo, a2, b2, w1, c1, w2, c2) = lp
        d = wq.shape[0]
        inv_sqrt_dk = 1.0 / math.sqrt(d // heads)
        wqkv_l.append(jnp.concatenate([wq * inv_sqrt_dk, wk, wv], axis=1))   # (D, 3D)
        bqkv_l.append(jnp.concatenate([bq * inv_sqrt_dk, bk, bv], axis=1))   # (1, 3D)
        wo_l.append(wo)
        w1_l.append(w1)
        w2_l.append(w2)
        c1_l.append(c1)
        small_l.append(jnp.concatenate([a1, b1, a2, b2, bo, c2], axis=0))    # (6, D)

    c = params["w_out"].shape[1]
    wout = jnp.zeros((params["w_out"].shape[0], out_pad), jnp.float32)
    wout = wout.at[:, :c].set(params["w_out"])
    bout = jnp.zeros((1, out_pad), jnp.float32).at[:, :c].set(params["b_out"])
    norm_head = jnp.concatenate([params["norm_alpha"], params["norm_bias"]], axis=0)

    bf = jnp.bfloat16
    return (
        jnp.stack(wqkv_l).astype(bf),   # (L, D, 3D)   bf16
        jnp.stack(bqkv_l),              # (L, 1, 3D)   f32
        jnp.stack(wo_l).astype(bf),     # (L, D, D)    bf16
        jnp.stack(w1_l).astype(bf),     # (L, D, dff)  bf16
        jnp.stack(w2_l).astype(bf),     # (L, dff, D)  bf16
        jnp.stack(c1_l),                # (L, 1, dff)  f32
        jnp.stack(small_l),             # (L, 6, D)    f32
        norm_head,                      # (2, D)       f32
        wout.astype(bf),                # (D, out_pad) bf16
        bout,                           # (1, out_pad) f32
    )


def _vmem_limit_bytes(per_layer_arrays, const_arrays, n_layers, act_bytes):
    def nb(a):
        return int(a.size) * jnp.dtype(a.dtype).itemsize
    per_layer = sum(nb(a) for a in per_layer_arrays) // n_layers
    const = sum(nb(a) for a in const_arrays)
    need = 2 * per_layer + const + act_bytes + (4 << 20)   # 2x = double-buffered
    return int(min(48 << 20, max(16 << 20, need)))


def seq_encoder_forward(src, embed_scaled, pe_table, packed, *,
                        n_layers, heads, class_num, out_pad):
    # Embedding gather + positional encoding are plain-JAX glue (sqrt(d_model)
    # already folded into embed_scaled; PE table precomputed).
    # TODO(synk): dropout omitted (identity in eval mode); blosum branch disabled;
    #             src_mask assumed None (plain softmax).
    B, S = src.shape
    x = jnp.take(embed_scaled, src, axis=0) + pe_table[None, :S, :]
    x2d = x.astype(jnp.float32).reshape(B * S, -1)
    D = x2d.shape[-1]

    (wqkv, bqkv, wo, w1, w2, c1, smalls, norm_head, wout, bout) = packed
    d_ff = w1.shape[-1]

    vmem_bytes = _vmem_limit_bytes(
        (wqkv, bqkv, wo, w1, w2, c1, smalls),
        (norm_head, wout, bout),
        n_layers,
        act_bytes=3 * B * S * D * 4 + B * out_pad * 4,
    )

    grid_spec = pltpu.PrefetchScalarGridSpec(
        num_scalar_prefetch=0,
        grid=(n_layers,),
        in_specs=[
            pl.BlockSpec((B * S, D), lambda l: (0, 0)),              # x (DMA'd once)
            pl.BlockSpec((None, D, 3 * D), lambda l: (l, 0, 0)),     # wqkv
            pl.BlockSpec((None, 1, 3 * D), lambda l: (l, 0, 0)),     # bqkv
            pl.BlockSpec((None, D, D), lambda l: (l, 0, 0)),         # wo
            pl.BlockSpec((None, D, d_ff), lambda l: (l, 0, 0)),      # w1
            pl.BlockSpec((None, d_ff, D), lambda l: (l, 0, 0)),      # w2
            pl.BlockSpec((None, 1, d_ff), lambda l: (l, 0, 0)),      # c1
            pl.BlockSpec((None, 6, D), lambda l: (l, 0, 0)),         # smalls
            pl.BlockSpec((2, D), lambda l: (0, 0)),                  # final norm a/b
            pl.BlockSpec((D, out_pad), lambda l: (0, 0)),            # w_out (padded)
            pl.BlockSpec((1, out_pad), lambda l: (0, 0)),            # b_out (padded)
        ],
        out_specs=pl.BlockSpec((B, out_pad), lambda l: (0, 0)),
        scratch_shapes=[pltpu.VMEM((B * S, D), jnp.float32)],        # resident x
    )

    out_padded = pl.pallas_call(
        functools.partial(fused_encoder_kernel, heads, B, S),
        out_shape=jax.ShapeDtypeStruct((B, out_pad), jnp.float32),
        grid_spec=grid_spec,
        compiler_params=pltpu.CompilerParams(
            dimension_semantics=("arbitrary",),
            vmem_limit_bytes=vmem_bytes),
    )(x2d, wqkv, bqkv, wo, w1, w2, c1, smalls, norm_head, wout, bout)

    return out_padded[:, :class_num]    # drop the lane padding outside the kernel


if __name__ == "__main__":
    # SeqEncoder(src_vocab, class_num, d_model, blosum=False, N, heads, dropout)
    SRC_VOCAB, CLASS_NUM, D_MODEL, N_LAYERS, HEADS = 20, 3, 32, 2, 4
    D_FF = 2048      # FeedForward default hidden size in the reference code
    B, S = 2, 8
    OUT_PAD = 128    # lane-dense classifier output width (sliced to CLASS_NUM outside)

    key = jax.random.PRNGKey(0)
    k_src, k_params = jax.random.split(key)
    src = jax.random.randint(k_src, (B, S), 0, SRC_VOCAB, dtype=jnp.int32)
    params = init_params(k_params, SRC_VOCAB, D_MODEL, D_FF, CLASS_NUM, N_LAYERS)

    pe_table = positional_encoding(S, D_MODEL)        # constant table, built once
    packed = pack_params(params, HEADS, OUT_PAD)      # one-time weight repack (bf16)

    out = seq_encoder_forward(src, params["embed_scaled"], pe_table, packed,
                              n_layers=N_LAYERS, heads=HEADS,
                              class_num=CLASS_NUM, out_pad=OUT_PAD)
    out = jax.block_until_ready(out)
    assert out.shape == (B, CLASS_NUM), out.shape
    assert bool(jnp.all(jnp.isfinite(out)))
    print("KERNEL_OK")
</pallas_src>

<mosaic_0001>
module attributes {stable_mosaic.version = 11 : i64} {
  func.func @fused_encoder_kernel(%arg0: i32, %arg1: memref<16x32xf32, #tpu.memory_space<vmem>>, %arg2: memref<1x32x96xbf16, #tpu.memory_space<vmem>>, %arg3: memref<1x1x96xf32, #tpu.memory_space<vmem>>, %arg4: memref<1x32x32xbf16, #tpu.memory_space<vmem>>, %arg5: memref<1x32x2048xbf16, #tpu.memory_space<vmem>>, %arg6: memref<1x2048x32xbf16, #tpu.memory_space<vmem>>, %arg7: memref<1x1x2048xf32, #tpu.memory_space<vmem>>, %arg8: memref<1x6x32xf32, #tpu.memory_space<vmem>>, %arg9: memref<2x32xf32, #tpu.memory_space<vmem>>, %arg10: memref<32x128xbf16, #tpu.memory_space<vmem>>, %arg11: memref<1x128xf32, #tpu.memory_space<vmem>>, %arg12: memref<2x128xf32, #tpu.memory_space<vmem>>, %arg13: memref<16x32xf32, #tpu.memory_space<vmem>>) attributes {dimension_semantics = [#tpu.dimension_semantics<arbitrary>], iteration_bounds = array<i64: 2>, scalar_prefetch = 0 : i64, scratch_operands = 1 : i64, tpu.core_type = #tpu.core_type<tc>, window_params = [{pipeline_mode = #tpu.pipeline_mode<synchronous>, transform_indices = @transform_0, window_bounds = array<i64: 16, 32>}, {transform_indices = @transform_1, window_bounds = array<i64: 1, 32, 96>}, {transform_indices = @transform_2, window_bounds = array<i64: 1, 1, 96>}, {transform_indices = @transform_3, window_bounds = array<i64: 1, 32, 32>}, {transform_indices = @transform_4, window_bounds = array<i64: 1, 32, 2048>}, {transform_indices = @transform_5, window_bounds = array<i64: 1, 2048, 32>}, {transform_indices = @transform_6, window_bounds = array<i64: 1, 1, 2048>}, {transform_indices = @transform_7, window_bounds = array<i64: 1, 6, 32>}, {pipeline_mode = #tpu.pipeline_mode<synchronous>, transform_indices = @transform_8, window_bounds = array<i64: 2, 32>}, {pipeline_mode = #tpu.pipeline_mode<synchronous>, transform_indices = @transform_9, window_bounds = array<i64: 32, 128>}, {pipeline_mode = #tpu.pipeline_mode<synchronous>, transform_indices = @transform_10, window_bounds = array<i64: 1, 128>}, {pipeline_mode = #tpu.pipeline_mode<synchronous>, transform_indices = @transform_11, window_bounds = array<i64: 2, 128>}]} {
    %c0_i32 = arith.constant 0 : i32
    %0 = arith.cmpi eq, %arg0, %c0_i32 : i32
    %1 = arith.extui %0 : i1 to i32
    %c0_i32_0 = arith.constant 0 : i32
    %2 = arith.cmpi ne, %1, %c0_i32_0 : i32
    scf.if %2 {
      %c0_66 = arith.constant 0 : index
      %c0_67 = arith.constant 0 : index
      %185 = vector.load %arg1[%c0_66, %c0_67] : memref<16x32xf32, #tpu.memory_space<vmem>>, vector<16x32xf32>
      %c0_68 = arith.constant 0 : index
      %c0_69 = arith.constant 0 : index
      %186 = vector.load %arg13[%c0_68, %c0_69] : memref<16x32xf32, #tpu.memory_space<vmem>>, vector<16x32xf32>
      tpu.vector_store %arg13[%c0_68, %c0_69], %185 {strides = array<i32>} : memref<16x32xf32, #tpu.memory_space<vmem>>, vector<16x32xf32>,
    } else {
    }
    %c0 = arith.constant 0 : index
    %c0_1 = arith.constant 0 : index
    %3 = vector.load %arg13[%c0, %c0_1] : memref<16x32xf32, #tpu.memory_space<vmem>>, vector<16x32xf32>
    %c0_2 = arith.constant 0 : index
    %c0_3 = arith.constant 0 : index
    %c0_4 = arith.constant 0 : index
    %4 = vector.load %arg8[%c0_2, %c0_3, %c0_4] : memref<1x6x32xf32, #tpu.memory_space<vmem>>, vector<1x1x32xf32>
    %5 = vector.shape_cast %4 : vector<1x1x32xf32> to vector<1x32xf32>
    %c0_5 = arith.constant 0 : index
    %c1 = arith.constant 1 : index
    %c0_6 = arith.constant 0 : index
    %6 = vector.load %arg8[%c0_5, %c1, %c0_6] : memref<1x6x32xf32, #tpu.memory_space<vmem>>, vector<1x1x32xf32>
    %7 = vector.shape_cast %6 : vector<1x1x32xf32> to vector<1x32xf32>
    %c0_7 = arith.constant 0 : index
    %c2 = arith.constant 2 : index
    %c0_8 = arith.constant 0 : index
    %8 = vector.load %arg8[%c0_7, %c2, %c0_8] : memref<1x6x32xf32, #tpu.memory_space<vmem>>, vector<1x1x32xf32>
    %9 = vector.shape_cast %8 : vector<1x1x32xf32> to vector<1x32xf32>
    %c0_9 = arith.constant 0 : index
    %c3 = arith.constant 3 : index
    %c0_10 = arith.constant 0 : index
    %10 = vector.load %arg8[%c0_9, %c3, %c0_10] : memref<1x6x32xf32, #tpu.memory_space<vmem>>, vector<1x1x32xf32>
    %11 = vector.shape_cast %10 : vector<1x1x32xf32> to vector<1x32xf32>
    %c0_11 = arith.constant 0 : index
    %c4 = arith.constant 4 : index
    %c0_12 = arith.constant 0 : index
    %12 = vector.load %arg8[%c0_11, %c4, %c0_12] : memref<1x6x32xf32, #tpu.memory_space<vmem>>, vector<1x1x32xf32>
    %13 = vector.shape_cast %12 : vector<1x1x32xf32> to vector<1x32xf32>
    %c0_13 = arith.constant 0 : index
    %c5 = arith.constant 5 : index
    %c0_14 = arith.constant 0 : index
    %14 = vector.load %arg8[%c0_13, %c5, %c0_14] : memref<1x6x32xf32, #tpu.memory_space<vmem>>, vector<1x1x32xf32>
    %15 = vector.shape_cast %14 : vector<1x1x32xf32> to vector<1x32xf32>
    %cst = arith.constant dense<0.000000e+00> : vector<16xf32>
    %16 = vector.multi_reduction <add>, %3, %cst [1] : vector<16x32xf32> to vector<16xf32>
    %17 = vector.shape_cast %16 : vector<16xf32> to vector<16x1xf32>
    %cst_15 = arith.constant 3.200000e+01 : f32
    %18 = vector.broadcast %cst_15 : f32 to vector<16x1xf32>
    %19 = arith.divf %17, %18 : vector<16x1xf32>
    %20 = vector.broadcast %19 : vector<16x1xf32> to vector<16x32xf32>
    %21 = arith.subf %3, %20 : vector<16x32xf32>
    %22 = arith.mulf %21, %21 : vector<16x32xf32>
    %cst_16 = arith.constant dense<0.000000e+00> : vector<16xf32>
    %23 = vector.multi_reduction <add>, %22, %cst_16 [1] : vector<16x32xf32> to vector<16xf32>
    %24 = vector.shape_cast %23 : vector<16xf32> to vector<16x1xf32>
    %cst_17 = arith.constant 0.0322580636 : f32
    %25 = vector.broadcast %cst_17 : f32 to vector<16x1xf32>
    %26 = arith.mulf %24, %25 : vector<16x1xf32>
    %27 = math.sqrt %26 : vector<16x1xf32>
    %cst_18 = arith.constant 9.99999997E-7 : f32
    %28 = vector.broadcast %cst_18 : f32 to vector<16x1xf32>
    %29 = arith.addf %27, %28 : vector<16x1xf32>
    %30 = vector.broadcast %29 : vector<16x1xf32> to vector<16x32xf32>
    %31 = arith.divf %21, %30 : vector<16x32xf32>
    %32 = vector.broadcast %5 : vector<1x32xf32> to vector<16x32xf32>
    %33 = arith.mulf %32, %31 : vector<16x32xf32>
    %34 = vector.broadcast %7 : vector<1x32xf32> to vector<16x32xf32>
    %35 = arith.addf %33, %34 : vector<16x32xf32>
    %36 = arith.truncf %35 : vector<16x32xf32> to vector<16x32xbf16>
    %c0_19 = arith.constant 0 : index
    %c0_20 = arith.constant 0 : index
    %c0_21 = arith.constant 0 : index
    %37 = vector.load %arg2[%c0_19, %c0_20, %c0_21] : memref<1x32x96xbf16, #tpu.memory_space<vmem>>, vector<1x32x96xbf16>
    %38 = vector.shape_cast %37 : vector<1x32x96xbf16> to vector<32x96xbf16>
    %cst_22 = arith.constant dense<0.000000e+00> : vector<16x96xf32>
    %39 = tpu.matmul %36, %38, %cst_22 {dimension_numbers = #tpu.dot_dimension_numbers<[1], [0], [0], [1], [0, 0, 1, 1], [], []>} : vector<16x32xbf16>, vector<32x96xbf16>, vector<16x96xf32> -> vector<16x96xf32>
    %c0_23 = arith.constant 0 : index
    %c0_24 = arith.constant 0 : index
    %c0_25 = arith.constant 0 : index
    %40 = vector.load %arg3[%c0_23, %c0_24, %c0_25] : memref<1x1x96xf32, #tpu.memory_space<vmem>>, vector<1x1x96xf32>
    %41 = vector.shape_cast %40 : vector<1x1x96xf32> to vector<1x96xf32>
    %42 = vector.broadcast %41 : vector<1x96xf32> to vector<16x96xf32>
    %43 = arith.addf %39, %42 : vector<16x96xf32>
    %44 = vector.extract_strided_slice %43 {offsets = [0, 0], sizes = [16, 8], strides = [1, 1]} : vector<16x96xf32> to vector<16x8xf32>
    %45 = vector.shape_cast %44 : vector<16x8xf32> to vector<2x8x8xf32>
    %46 = arith.truncf %45 : vector<2x8x8xf32> to vector<2x8x8xbf16>
    %47 = vector.extract_strided_slice %43 {offsets = [0, 32], sizes = [16, 8], strides = [1, 1]} : vector<16x96xf32> to vector<16x8xf32>
    %48 = vector.shape_cast %47 : vector<16x8xf32> to vector<2x8x8xf32>
    %49 = arith.truncf %48 : vector<2x8x8xf32> to vector<2x8x8xbf16>
    %50 = vector.extract_strided_slice %43 {offsets = [0, 64], sizes = [16, 8], strides = [1, 1]} : vector<16x96xf32> to vector<16x8xf32>
    %51 = vector.shape_cast %50 : vector<16x8xf32> to vector<2x8x8xf32>
    %52 = arith.truncf %51 : vector<2x8x8xf32> to vector<2x8x8xbf16>
    "tpu.trace_start"() <{level = 10 : i32, message = "bqd,bkd->bqk"}> : () -> ()
    %cst_26 = arith.constant dense<0.000000e+00> : vector<2x8x8xf32>
    %53 = tpu.matmul %46, %49, %cst_26 {dimension_numbers = #tpu.dot_dimension_numbers<[2], [2], [1], [1], [0, 0, 0, 1, 1, 1], [0], [0]>} : vector<2x8x8xbf16>, vector<2x8x8xbf16>, vector<2x8x8xf32> -> vector<2x8x8xf32>
    "tpu.trace_stop"() : () -> ()
    %cst_27 = arith.constant dense<0xFF800000> : vector<2x8xf32>
    %54 = vector.multi_reduction <maximumf>, %53, %cst_27 [2] : vector<2x8x8xf32> to vector<2x8xf32>
    %55 = vector.shape_cast %54 : vector<2x8xf32> to vector<2x8x1xf32>
    %56 = vector.broadcast %55 : vector<2x8x1xf32> to vector<2x8x8xf32>
    %57 = arith.subf %53, %56 : vector<2x8x8xf32>
    %58 = math.exp %57 : vector<2x8x8xf32>
    %cst_28 = arith.constant dense<0.000000e+00> : vector<2x8xf32>
    %59 = vector.multi_reduction <add>, %58, %cst_28 [2] : vector<2x8x8xf32> to vector<2x8xf32>
    %60 = vector.shape_cast %59 : vector<2x8xf32> to vector<2x8x1xf32>
    %61 = tpu.reciprocal %60 {approx = true} : vector<2x8x1xf32> -> vector<2x8x1xf32>
    %62 = vector.broadcast %61 : vector<2x8x1xf32> to vector<2x8x8xf32>
    %63 = arith.mulf %58, %62 : vector<2x8x8xf32>
    %64 = arith.truncf %63 : vector<2x8x8xf32> to vector<2x8x8xbf16>
    "tpu.trace_start"() <{level = 10 : i32, message = "bqk,bkd->bqd"}> : () -> ()
    %cst_29 = arith.constant dense<0.000000e+00> : vector<2x8x8xf32>
    %65 = tpu.matmul %64, %52, %cst_29 {dimension_numbers = #tpu.dot_dimension_numbers<[2], [1], [1], [2], [0, 0, 0, 1, 1, 2], [0], [0]>} : vector<2x8x8xbf16>, vector<2x8x8xbf16>, vector<2x8x8xf32> -> vector<2x8x8xf32>
    "tpu.trace_stop"() : () -> ()
    %66 = vector.shape_cast %65 : vector<2x8x8xf32> to vector<16x8xf32>
    %67 = vector.extract_strided_slice %43 {offsets = [0, 8], sizes = [16, 8], strides = [1, 1]} : vector<16x96xf32> to vector<16x8xf32>
    %68 = vector.shape_cast %67 : vector<16x8xf32> to vector<2x8x8xf32>
    %69 = arith.truncf %68 : vector<2x8x8xf32> to vector<2x8x8xbf16>
    %70 = vector.extract_strided_slice %43 {offsets = [0, 40], sizes = [16, 8], strides = [1, 1]} : vector<16x96xf32> to vector<16x8xf32>
    %71 = vector.shape_cast %70 : vector<16x8xf32> to vector<2x8x8xf32>
    %72 = arith.truncf %71 : vector<2x8x8xf32> to vector<2x8x8xbf16>
    %73 = vector.extract_strided_slice %43 {offsets = [0, 72], sizes = [16, 8], strides = [1, 1]} : vector<16x96xf32> to vector<16x8xf32>
    %74 = vector.shape_cast %73 : vector<16x8xf32> to vector<2x8x8xf32>
    %75 = arith.truncf %74 : vector<2x8x8xf32> to vector<2x8x8xbf16>
    "tpu.trace_start"() <{level = 10 : i32, message = "bqd,bkd->bqk"}> : () -> ()
    %cst_30 = arith.constant dense<0.000000e+00> : vector<2x8x8xf32>
    %76 = tpu.matmul %69, %72, %cst_30 {dimension_numbers = #tpu.dot_dimension_numbers<[2], [2], [1], [1], [0, 0, 0, 1, 1, 1], [0], [0]>} : vector<2x8x8xbf16>, vector<2x8x8xbf16>, vector<2x8x8xf32> -> vector<2x8x8xf32>
    "tpu.trace_stop"() : () -> ()
    %cst_31 = arith.constant dense<0xFF800000> : vector<2x8xf32>
    %77 = vector.multi_reduction <maximumf>, %76, %cst_31 [2] : vector<2x8x8xf32> to vector<2x8xf32>
    %78 = vector.shape_cast %77 : vector<2x8xf32> to vector<2x8x1xf32>
    %79 = vector.broadcast %78 : vector<2x8x1xf32> to vector<2x8x8xf32>
    %80 = arith.subf %76, %79 : vector<2x8x8xf32>
    %81 = math.exp %80 : vector<2x8x8xf32>
    %cst_32 = arith.constant dense<0.000000e+00> : vector<2x8xf32>
    %82 = vector.multi_reduction <add>, %81, %cst_32 [2] : vector<2x8x8xf32> to vector<2x8xf32>
    %83 = vector.shape_cast %82 : vector<2x8xf32> to vector<2x8x1xf32>
    %84 = tpu.reciprocal %83 {approx = true} : vector<2x8x1xf32> -> vector<2x8x1xf32>
    %85 = vector.broadcast %84 : vector<2x8x1xf32> to vector<2x8x8xf32>
    %86 = arith.mulf %81, %85 : vector<2x8x8xf32>
    %87 = arith.truncf %86 : vector<2x8x8xf32> to vector<2x8x8xbf16>
    "tpu.trace_start"() <{level = 10 : i32, message = "bqk,bkd->bqd"}> : () -> ()
    %cst_33 = arith.constant dense<0.000000e+00> : vector<2x8x8xf32>
    %88 = tpu.matmul %87, %75, %cst_33 {dimension_numbers = #tpu.dot_dimension_numbers<[2], [1], [1], [2], [0, 0, 0, 1, 1, 2], [0], [0]>} : vector<2x8x8xbf16>, vector<2x8x8xbf16>, vector<2x8x8xf32> -> vector<2x8x8xf32>
    "tpu.trace_stop"() : () -> ()
    %89 = vector.shape_cast %88 : vector<2x8x8xf32> to vector<16x8xf32>
    %90 = vector.extract_strided_slice %43 {offsets = [0, 16], sizes = [16, 8], strides = [1, 1]} : vector<16x96xf32> to vector<16x8xf32>
    %91 = vector.shape_cast %90 : vector<16x8xf32> to vector<2x8x8xf32>
    %92 = arith.truncf %91 : vector<2x8x8xf32> to vector<2x8x8xbf16>
    %93 = vector.extract_strided_slice %43 {offsets = [0, 48], sizes = [16, 8], strides = [1, 1]} : vector<16x96xf32> to vector<16x8xf32>
    %94 = vector.shape_cast %93 : vector<16x8xf32> to vector<2x8x8xf32>
    %95 = arith.truncf %94 : vector<2x8x8xf32> to vector<2x8x8xbf16>
    %96 = vector.extract_strided_slice %43 {offsets = [0, 80], sizes = [16, 8], strides = [1, 1]} : vector<16x96xf32> to vector<16x8xf32>
    %97 = vector.shape_cast %96 : vector<16x8xf32> to vector<2x8x8xf32>
    %98 = arith.truncf %97 : vector<2x8x8xf32> to vector<2x8x8xbf16>
    "tpu.trace_start"() <{level = 10 : i32, message = "bqd,bkd->bqk"}> : () -> ()
    %cst_34 = arith.constant dense<0.000000e+00> : vector<2x8x8xf32>
    %99 = tpu.matmul %92, %95, %cst_34 {dimension_numbers = #tpu.dot_dimension_numbers<[2], [2], [1], [1], [0, 0, 0, 1, 1, 1], [0], [0]>} : vector<2x8x8xbf16>, vector<2x8x8xbf16>, vector<2x8x8xf32> -> vector<2x8x8xf32>
    "tpu.trace_stop"() : () -> ()
    %cst_35 = arith.constant dense<0xFF800000> : vector<2x8xf32>
    %100 = vector.multi_reduction <maximumf>, %99, %cst_35 [2] : vector<2x8x8xf32> to vector<2x8xf32>
    %101 = vector.shape_cast %100 : vector<2x8xf32> to vector<2x8x1xf32>
    %102 = vector.broadcast %101 : vector<2x8x1xf32> to vector<2x8x8xf32>
    %103 = arith.subf %99, %102 : vector<2x8x8xf32>
    %104 = math.exp %103 : vector<2x8x8xf32>
    %cst_36 = arith.constant dense<0.000000e+00> : vector<2x8xf32>
    %105 = vector.multi_reduction <add>, %104, %cst_36 [2] : vector<2x8x8xf32> to vector<2x8xf32>
    %106 = vector.shape_cast %105 : vector<2x8xf32> to vector<2x8x1xf32>
    %107 = tpu.reciprocal %106 {approx = true} : vector<2x8x1xf32> -> vector<2x8x1xf32>
    %108 = vector.broadcast %107 : vector<2x8x1xf32> to vector<2x8x8xf32>
    %109 = arith.mulf %104, %108 : vector<2x8x8xf32>
    %110 = arith.truncf %109 : vector<2x8x8xf32> to vector<2x8x8xbf16>
    "tpu.trace_start"() <{level = 10 : i32, message = "bqk,bkd->bqd"}> : () -> ()
    %cst_37 = arith.constant dense<0.000000e+00> : vector<2x8x8xf32>
    %111 = tpu.matmul %110, %98, %cst_37 {dimension_numbers = #tpu.dot_dimension_numbers<[2], [1], [1], [2], [0, 0, 0, 1, 1, 2], [0], [0]>} : vector<2x8x8xbf16>, vector<2x8x8xbf16>, vector<2x8x8xf32> -> vector<2x8x8xf32>
    "tpu.trace_stop"() : () -> ()
    %112 = vector.shape_cast %111 : vector<2x8x8xf32> to vector<16x8xf32>
    %113 = vector.extract_strided_slice %43 {offsets = [0, 24], sizes = [16, 8], strides = [1, 1]} : vector<16x96xf32> to vector<16x8xf32>
    %114 = vector.shape_cast %113 : vector<16x8xf32> to vector<2x8x8xf32>
    %115 = arith.truncf %114 : vector<2x8x8xf32> to vector<2x8x8xbf16>
    %116 = vector.extract_strided_slice %43 {offsets = [0, 56], sizes = [16, 8], strides = [1, 1]} : vector<16x96xf32> to vector<16x8xf32>
    %117 = vector.shape_cast %116 : vector<16x8xf32> to vector<2x8x8xf32>
    %118 = arith.truncf %117 : vector<2x8x8xf32> to vector<2x8x8xbf16>
    %119 = vector.extract_strided_slice %43 {offsets = [0, 88], sizes = [16, 8], strides = [1, 1]} : vector<16x96xf32> to vector<16x8xf32>
    %120 = vector.shape_cast %119 : vector<16x8xf32> to vector<2x8x8xf32>
    %121 = arith.truncf %120 : vector<2x8x8xf32> to vector<2x8x8xbf16>
    "tpu.trace_start"() <{level = 10 : i32, message = "bqd,bkd->bqk"}> : () -> ()
    %cst_38 = arith.constant dense<0.000000e+00> : vector<2x8x8xf32>
    %122 = tpu.matmul %115, %118, %cst_38 {dimension_numbers = #tpu.dot_dimension_numbers<[2], [2], [1], [1], [0, 0, 0, 1, 1, 1], [0], [0]>} : vector<2x8x8xbf16>, vector<2x8x8xbf16>, vector<2x8x8xf32> -> vector<2x8x8xf32>
    "tpu.trace_stop"() : () -> ()
    %cst_39 = arith.constant dense<0xFF800000> : vector<2x8xf32>
    %123 = vector.multi_reduction <maximumf>, %122, %cst_39 [2] : vector<2x8x8xf32> to vector<2x8xf32>
    %124 = vector.shape_cast %123 : vector<2x8xf32> to vector<2x8x1xf32>
    %125 = vector.broadcast %124 : vector<2x8x1xf32> to vector<2x8x8xf32>
    %126 = arith.subf %122, %125 : vector<2x8x8xf32>
    %127 = math.exp %126 : vector<2x8x8xf32>
    %cst_40 = arith.constant dense<0.000000e+00> : vector<2x8xf32>
    %128 = vector.multi_reduction <add>, %127, %cst_40 [2] : vector<2x8x8xf32> to vector<2x8xf32>
    %129 = vector.shape_cast %128 : vector<2x8xf32> to vector<2x8x1xf32>
    %130 = tpu.reciprocal %129 {approx = true} : vector<2x8x1xf32> -> vector<2x8x1xf32>
    %131 = vector.broadcast %130 : vector<2x8x1xf32> to vector<2x8x8xf32>
    %132 = arith.mulf %127, %131 : vector<2x8x8xf32>
    %133 = arith.truncf %132 : vector<2x8x8xf32> to vector<2x8x8xbf16>
    "tpu.trace_start"() <{level = 10 : i32, message = "bqk,bkd->bqd"}> : () -> ()
    %cst_41 = arith.constant dense<0.000000e+00> : vector<2x8x8xf32>
    %134 = tpu.matmul %133, %121, %cst_41 {dimension_numbers = #tpu.dot_dimension_numbers<[2], [1], [1], [2], [0, 0, 0, 1, 1, 2], [0], [0]>} : vector<2x8x8xbf16>, vector<2x8x8xbf16>, vector<2x8x8xf32> -> vector<2x8x8xf32>
    "tpu.trace_stop"() : () -> ()
    %135 = vector.shape_cast %134 : vector<2x8x8xf32> to vector<16x8xf32>
    %136 = tpu.concatenate %66, %89, %112, %135 in 1 : vector<16x8xf32>, vector<16x8xf32>, vector<16x8xf32>, vector<16x8xf32> -> vector<16x32xf32>
    %137 = arith.truncf %136 : vector<16x32xf32> to vector<16x32xbf16>
    %c0_42 = arith.constant 0 : index
    %c0_43 = arith.constant 0 : index
    %c0_44 = arith.constant 0 : index
    %138 = vector.load %arg4[%c0_42, %c0_43, %c0_44] : memref<1x32x32xbf16, #tpu.memory_space<vmem>>, vector<1x32x32xbf16>
    %139 = vector.shape_cast %138 : vector<1x32x32xbf16> to vector<32x32xbf16>
    %cst_45 = arith.constant dense<0.000000e+00> : vector<16x32xf32>
    %140 = tpu.matmul %137, %139, %cst_45 {dimension_numbers = #tpu.dot_dimension_numbers<[1], [0], [0], [1], [0, 0, 1, 1], [], []>} : vector<16x32xbf16>, vector<32x32xbf16>, vector<16x32xf32> -> vector<16x32xf32>
    %141 = vector.broadcast %13 : vector<1x32xf32> to vector<16x32xf32>
    %142 = arith.addf %140, %141 : vector<16x32xf32>
    %143 = arith.addf %3, %142 : vector<16x32xf32>
    %cst_46 = arith.constant dense<0.000000e+00> : vector<16xf32>
    %144 = vector.multi_reduction <add>, %143, %cst_46 [1] : vector<16x32xf32> to vector<16xf32>
    %145 = vector.shape_cast %144 : vector<16xf32> to vector<16x1xf32>
    %cst_47 = arith.constant 3.200000e+01 : f32
    %146 = vector.broadcast %cst_47 : f32 to vector<16x1xf32>
    %147 = arith.divf %145, %146 : vector<16x1xf32>
    %148 = vector.broadcast %147 : vector<16x1xf32> to vector<16x32xf32>
    %149 = arith.subf %143, %148 : vector<16x32xf32>
    %150 = arith.mulf %149, %149 : vector<16x32xf32>
    %cst_48 = arith.constant dense<0.000000e+00> : vector<16xf32>
    %151 = vector.multi_reduction <add>, %150, %cst_48 [1] : vector<16x32xf32> to vector<16xf32>
    %152 = vector.shape_cast %151 : vector<16xf32> to vector<16x1xf32>
    %cst_49 = arith.constant 0.0322580636 : f32
    %153 = vector.broadcast %cst_49 : f32 to vector<16x1xf32>
    %154 = arith.mulf %152, %153 : vector<16x1xf32>
    %155 = math.sqrt %154 : vector<16x1xf32>
    %cst_50 = arith.constant 9.99999997E-7 : f32
    %156 = vector.broadcast %cst_50 : f32 to vector<16x1xf32>
    %157 = arith.addf %155, %156 : vector<16x1xf32>
    %158 = vector.broadcast %157 : vector<16x1xf32> to vector<16x32xf32>
    %159 = arith.divf %149, %158 : vector<16x32xf32>
    %160 = vector.broadcast %9 : vector<1x32xf32> to vector<16x32xf32>
    %161 = arith.mulf %160, %159 : vector<16x32xf32>
    %162 = vector.broadcast %11 : vector<1x32xf32> to vector<16x32xf32>
    %163 = arith.addf %161, %162 : vector<16x32xf32>
    %164 = arith.truncf %163 : vector<16x32xf32> to vector<16x32xbf16>
    %c0_51 = arith.constant 0 : index
    %c0_52 = arith.constant 0 : index
    %c0_53 = arith.constant 0 : index
    %165 = vector.load %arg5[%c0_51, %c0_52, %c0_53] : memref<1x32x2048xbf16, #tpu.memory_space<vmem>>, vector<1x32x2048xbf16>
    %166 = vector.shape_cast %165 : vector<1x32x2048xbf16> to vector<32x2048xbf16>
    %cst_54 = arith.constant dense<0.000000e+00> : vector<16x2048xf32>
    %167 = tpu.matmul %164, %166, %cst_54 {dimension_numbers = #tpu.dot_dimension_numbers<[1], [0], [0], [1], [0, 0, 1, 1], [], []>} : vector<16x32xbf16>, vector<32x2048xbf16>, vector<16x2048xf32> -> vector<16x2048xf32>
    %c0_55 = arith.constant 0 : index
    %c0_56 = arith.constant 0 : index
    %c0_57 = arith.constant 0 : index
    %168 = vector.load %arg7[%c0_55, %c0_56, %c0_57] : memref<1x1x2048xf32, #tpu.memory_space<vmem>>, vector<1x1x2048xf32>
    %169 = vector.shape_cast %168 : vector<1x1x2048xf32> to vector<1x2048xf32>
    %170 = vector.broadcast %169 : vector<1x2048xf32> to vector<16x2048xf32>
    %171 = arith.addf %167, %170 : vector<16x2048xf32>
    %cst_58 = arith.constant 0.000000e+00 : f32
    %172 = vector.broadcast %cst_58 : f32 to vector<16x2048xf32>
    %173 = arith.maximumf %171, %172 : vector<16x2048xf32>
    %174 = arith.truncf %173 : vector<16x2048xf32> to vector<16x2048xbf16>
    %c0_59 = arith.constant 0 : index
    %c0_60 = arith.constant 0 : index
    %c0_61 = arith.constant 0 : index
    %175 = vector.load %arg6[%c0_59, %c0_60, %c0_61] : memref<1x2048x32xbf16, #tpu.memory_space<vmem>>, vector<1x2048x32xbf16>
    %176 = vector.shape_cast %175 : vector<1x2048x32xbf16> to vector<2048x32xbf16>
    %cst_62 = arith.constant dense<0.000000e+00> : vector<16x32xf32>
    %177 = tpu.matmul %174, %176, %cst_62 {dimension_numbers = #tpu.dot_dimension_numbers<[1], [0], [0], [1], [0, 0, 1, 1], [], []>} : vector<16x2048xbf16>, vector<2048x32xbf16>, vector<16x32xf32> -> vector<16x32xf32>
    %178 = vector.broadcast %15 : vector<1x32xf32> to vector<16x32xf32>
    %179 = arith.addf %177, %178 : vector<16x32xf32>
    %180 = arith.addf %143, %179 : vector<16x32xf32>
    %c0_63 = arith.constant 0 : index
    %c0_64 = arith.constant 0 : index
    %181 = vector.load %arg13[%c0_63, %c0_64] : memref<16x32xf32, #tpu.memory_space<vmem>>, vector<16x32xf32>
    tpu.vector_store %arg13[%c0_63, %c0_64], %180 {strides = array<i32>} : memref<16x32xf32, #tpu.memory_space<vmem>>, vector<16x32xf32>,
    %c1_i32 = arith.constant 1 : i32
    %182 = arith.cmpi eq, %arg0, %c1_i32 : i32
    %183 = arith.extui %182 : i1 to i32
    %c0_i32_65 = arith.constant 0 : i32
    %184 = arith.cmpi ne, %183, %c0_i32_65 : i32
    scf.if %184 {
      %185 = vector.shape_cast %180 : vector<16x32xf32> to vector<2x8x32xf32>
      %186 = vector.extract_strided_slice %185 {offsets = [0, 0, 0], sizes = [2, 1, 32], strides = [1, 1, 1]} : vector<2x8x32xf32> to vector<2x1x32xf32>
      %187 = vector.shape_cast %186 : vector<2x1x32xf32> to vector<2x32xf32>
      %c0_66 = arith.constant 0 : index
      %c0_67 = arith.constant 0 : index
      %188 = vector.load %arg9[%c0_66, %c0_67] : memref<2x32xf32, #tpu.memory_space<vmem>>, vector<1x32xf32>
      %c1_68 = arith.constant 1 : index
      %c0_69 = arith.constant 0 : index
      %189 = vector.load %arg9[%c1_68, %c0_69] : memref<2x32xf32, #tpu.memory_space<vmem>>, vector<1x32xf32>
      %cst_70 = arith.constant dense<0.000000e+00> : vector<2xf32>
      %190 = vector.multi_reduction <add>, %187, %cst_70 [1] : vector<2x32xf32> to vector<2xf32>
      %191 = vector.shape_cast %190 : vector<2xf32> to vector<2x1xf32>
      %cst_71 = arith.constant 3.200000e+01 : f32
      %192 = vector.broadcast %cst_71 : f32 to vector<2x1xf32>
      %193 = arith.divf %191, %192 : vector<2x1xf32>
      %194 = vector.broadcast %193 : vector<2x1xf32> to vector<2x32xf32>
      %195 = arith.subf %187, %194 : vector<2x32xf32>
      %196 = arith.mulf %195, %195 : vector<2x32xf32>
      %cst_72 = arith.constant dense<0.000000e+00> : vector<2xf32>
      %197 = vector.multi_reduction <add>, %196, %cst_72 [1] : vector<2x32xf32> to vector<2xf32>
      %198 = vector.shape_cast %197 : vector<2xf32> to vector<2x1xf32>
      %cst_73 = arith.constant 0.0322580636 : f32
      %199 = vector.broadcast %cst_73 : f32 to vector<2x1xf32>
      %200 = arith.mulf %198, %199 : vector<2x1xf32>
      %201 = math.sqrt %200 : vector<2x1xf32>
      %cst_74 = arith.constant 9.99999997E-7 : f32
      %202 = vector.broadcast %cst_74 : f32 to vector<2x1xf32>
      %203 = arith.addf %201, %202 : vector<2x1xf32>
      %204 = vector.broadcast %203 : vector<2x1xf32> to vector<2x32xf32>
      %205 = arith.divf %195, %204 : vector<2x32xf32>
      %206 = vector.broadcast %188 : vector<1x32xf32> to vector<2x32xf32>
      %207 = arith.mulf %206, %205 : vector<2x32xf32>
      %208 = vector.broadcast %189 : vector<1x32xf32> to vector<2x32xf32>
      %209 = arith.addf %207, %208 : vector<2x32xf32>
      %210 = arith.truncf %209 : vector<2x32xf32> to vector<2x32xbf16>
      %c0_75 = arith.constant 0 : index
      %c0_76 = arith.constant 0 : index
      %211 = vector.load %arg10[%c0_75, %c0_76] : memref<32x128xbf16, #tpu.memory_space<vmem>>, vector<32x128xbf16>
      %cst_77 = arith.constant dense<0.000000e+00> : vector<2x128xf32>
      %212 = tpu.matmul %210, %211, %cst_77 {dimension_numbers = #tpu.dot_dimension_numbers<[1], [0], [0], [1], [0, 0, 1, 1], [], []>} : vector<2x32xbf16>, vector<32x128xbf16>, vector<2x128xf32> -> vector<2x128xf32>
      %c0_78 = arith.constant 0 : index
      %c0_79 = arith.constant 0 : index
      %213 = vector.load %arg11[%c0_78, %c0_79] : memref<1x128xf32, #tpu.memory_space<vmem>>, vector<1x128xf32>
      %214 = vector.broadcast %213 : vector<1x128xf32> to vector<2x128xf32>
      %215 = arith.addf %212, %214 : vector<2x128xf32>
      %c0_80 = arith.constant 0 : index
      %c0_81 = arith.constant 0 : index
      %216 = vector.load %arg12[%c0_80, %c0_81] : memref<2x128xf32, #tpu.memory_space<vmem>>, vector<2x128xf32>
      tpu.vector_store %arg12[%c0_80, %c0_81], %215 {strides = array<i32>} : memref<2x128xf32, #tpu.memory_space<vmem>>, vector<2x128xf32>,
    } else {
    }
    return
  }
  func.func @transform_0(%arg0: i32) -> (i32, i32) {
    %c0_i32 = arith.constant 0 : i32
    %c0_i32_0 = arith.constant 0 : i32
    %c0_i32_1 = arith.constant 0 : i32
    return %c0_i32, %c0_i32_0 : i32, i32
  }
  func.func @transform_1(%arg0: i32) -> (i32, i32, i32) {
    %c0_i32 = arith.constant 0 : i32
    %c0_i32_0 = arith.constant 0 : i32
    %c0_i32_1 = arith.constant 0 : i32
    return %arg0, %c0_i32, %c0_i32_0 : i32, i32, i32
  }
  func.func @transform_2(%arg0: i32) -> (i32, i32, i32) {
    %c0_i32 = arith.constant 0 : i32
    %c0_i32_0 = arith.constant 0 : i32
    %c0_i32_1 = arith.constant 0 : i32
    return %arg0, %c0_i32, %c0_i32_0 : i32, i32, i32
  }
  func.func @transform_3(%arg0: i32) -> (i32, i32, i32) {
    %c0_i32 = arith.constant 0 : i32
    %c0_i32_0 = arith.constant 0 : i32
    %c0_i32_1 = arith.constant 0 : i32
    return %arg0, %c0_i32, %c0_i32_0 : i32, i32, i32
  }
  func.func @transform_4(%arg0: i32) -> (i32, i32, i32) {
    %c0_i32 = arith.constant 0 : i32
    %c0_i32_0 = arith.constant 0 : i32
    %c0_i32_1 = arith.constant 0 : i32
    return %arg0, %c0_i32, %c0_i32_0 : i32, i32, i32
  }
  func.func @transform_5(%arg0: i32) -> (i32, i32, i32) {
    %c0_i32 = arith.constant 0 : i32
    %c0_i32_0 = arith.constant 0 : i32
    %c0_i32_1 = arith.constant 0 : i32
    return %arg0, %c0_i32, %c0_i32_0 : i32, i32, i32
  }
  func.func @transform_6(%arg0: i32) -> (i32, i32, i32) {
    %c0_i32 = arith.constant 0 : i32
    %c0_i32_0 = arith.constant 0 : i32
    %c0_i32_1 = arith.constant 0 : i32
    return %arg0, %c0_i32, %c0_i32_0 : i32, i32, i32
  }
  func.func @transform_7(%arg0: i32) -> (i32, i32, i32) {
    %c0_i32 = arith.constant 0 : i32
    %c0_i32_0 = arith.constant 0 : i32
    %c0_i32_1 = arith.constant 0 : i32
    return %arg0, %c0_i32, %c0_i32_0 : i32, i32, i32
  }
  func.func @transform_8(%arg0: i32) -> (i32, i32) {
    %c0_i32 = arith.constant 0 : i32
    %c0_i32_0 = arith.constant 0 : i32
    %c0_i32_1 = arith.constant 0 : i32
    return %c0_i32, %c0_i32_0 : i32, i32
  }
  func.func @transform_9(%arg0: i32) -> (i32, i32) {
    %c0_i32 = arith.constant 0 : i32
    %c0_i32_0 = arith.constant 0 : i32
    %c0_i32_1 = arith.constant 0 : i32
    return %c0_i32, %c0_i32_0 : i32, i32
  }
  func.func @transform_10(%arg0: i32) -> (i32, i32) {
    %c0_i32 = arith.constant 0 : i32
    %c0_i32_0 = arith.constant 0 : i32
    %c0_i32_1 = arith.constant 0 : i32
    return %c0_i32, %c0_i32_0 : i32, i32
  }
  func.func @transform_11(%arg0: i32) -> (i32, i32) {
    %c0_i32 = arith.constant 0 : i32
    %c0_i32_0 = arith.constant 0 : i32
    %c0_i32_1 = arith.constant 0 : i32
    return %c0_i32, %c0_i32_0 : i32, i32
  }
}

</mosaic_0001>

<bundles_post_ra>
// kernel: tpu_custom_call.1
= control target key start
LH: loop header
LB: loop body
LE: loop exit
PB: predicated region body
PF: predicated region fallthrough
CT: control target
= control target key end

     0   :  { %s5418_s0 = inlined_call_operand.vmem [shape: f32[16,32], index: 0, kind: input, shape index: {}]   ;;  %s5419_s1 = inlined_call_operand.vmem [shape: bf16[2,32,96], index: 1, kind: input, shape index: {}]   ;;  %s5420_s2 = inlined_call_operand.vmem [shape: f32[2,1,96], index: 2, kind: input, shape index: {}]   ;;  %s5421_s3 = inlined_call_operand.vmem [shape: bf16[2,32,32], index: 3, kind: input, shape index: {}]   ;;  %s5422_s4 = inlined_call_operand.vmem [shape: bf16[2,32,2048], index: 4, kind: input, shape index: {}]   ;;  %s5423_s5 = inlined_call_operand.vmem [shape: bf16[2,2048,32], index: 5, kind: input, shape index: {}]   ;;  %s5424_s6 = inlined_call_operand.vmem [shape: f32[2,1,2048], index: 6, kind: input, shape index: {}]   ;;  %s5425_s7 = inlined_call_operand.vmem [shape: f32[2,6,32], index: 7, kind: input, shape index: {}]   ;;  %s5426_s8 = inlined_call_operand.vmem [shape: f32[2,32], index: 8, kind: input, shape index: {}]   ;;  %s5427_s9 = inlined_call_operand.vmem [shape: bf16[32,128], index: 9, kind: input, shape index: {}]   ;;  %s5428_s10 = inlined_call_operand.vmem [shape: f32[1,128], index: 10, kind: input, shape index: {}]   ;;  %s5429_s11 = inlined_call_operand.hbm [shape: f32[2,128], index: 11, kind: output, shape index: {}]  }
   0x1   :  { %5430 = sst [smem:[#allocation6_spill]] %s5419_s1 }
   0x2   :  { %5431 = sst [smem:[#allocation7_spill]] %s5421_s3 }
   0x3   :  { %16 = vsyncpa [#allocation4], 0  ;;  %s4855_s17 = smov 0  }
   0x4 LB: > { %s4861_s18 = sadd.s32 4294967295, %s4773_s17   ;;  %p3937_p0 = scmp.ge.s32.totalorder %s4773_s17, 1  ;;  %s4773_s17 = sphi %s4855_s17, %s22_s17  }
   0x5   : > { %p389_p1 = scmp.lt.s32.totalorder %s4773_s17, 3 }
   0x7   : > { %p390_p2 = pnand %p3937_p0, %p389_p1 }
   0x8   : > { %p450_p3 = scmp.lt.s32.totalorder (!%p390_p2), %s4861_s18, 1  ;;  %s5432_s1 = sld [smem:[#allocation6_spill]] (!%p390_p2) }
   0x9   : > { %393 = sbr.rel (%p390_p2) target bundleno = 4851 (0x12f3), region = 64  ;;  %s5433_s3 = sld [smem:[#allocation7_spill]] (!%p390_p2) }
   0xa   : > { %p3948_p4 = scmp.ne.s32.totalorder (!%p390_p2), %s4861_s18, 0 }
  0x10   : > { %s4867_s19 = scalar_select %p450_p3, %s4861_s18, 1 }
  0x11   : > { %485 = sbr.rel (%p3948_p4) target bundleno = 24 (0x18), region = 68  ;;  %v486_v0 = vld [vmem:[%s5418_s0] sm:$0xff] (!%p3948_p4)  ;;  %vm488_vm0 = vcmask (!%p3948_p4), 261120   ;;  %v487_v1 = vld [vmem:[%s5418_s0 + $0x8] sm:$0xff] (!%p3948_p4) }
  0x12   : > { %s4157_s20 = sshll.u32 %s4867_s19, 4  ;;  %s4159_s30 = sshll.u32 %s4867_s19, 8  ;;  %489 = vst.msk [vmem:[#allocation2] sm:$0xff] (!%p3948_p4), %vm488_vm0, %v486_v0  ;;  %490 = vst.msk [vmem:[#allocation2 + $0x8] sm:$0xff] (!%p3948_p4), %vm488_vm0, %v487_v1 }
  0x13   : > { %s4877_s26 = scalar_lea.vmem %s5432_s1, %s4157_s20  ;;  %s4882_s29 = scalar_lea.vmem %s5433_s3, %s4157_s20 }
  0x14   : > { %s4160_s12 = sshll.u32 %s4867_s19, 10  ;;  %s4889_s15 = scalar_lea.vmem %s5422_s4, %s4159_s30 }
  0x15   : > { %s4894_s22 = scalar_lea.vmem %s5423_s5, %s4160_s12  ;;  %s4899_s23 = scalar_lea.vmem %s5424_s6, %s4157_s20 }
  0x16   : > { %s3947_s27 = sshll.u32 %s4867_s19, 3 }
  0x17   : > { %s4905_s3 = scalar_lea.vmem %s5425_s7, %s3947_s27 }
  0x18 PF: > { %vm499_vm1 = vcmask 261120   ;;  %v4547_v16 = vld [vmem:[%s4877_s26] sm:$0xff]   ;;  %v4775_v17 = vmov 0.0   ;;  %vm4776_vm2 = vmmov 0   ;;  %v4548_v18 = vld [vmem:[%s4877_s26 + $0x8] sm:$0xff]   ;;  %s5434_s26 = scalar_lea.vmem %s5420_s2, %s4867_s19  ;;  %s4777_s16 = smov 96  }
  0x19   : > { %v491_v2 = vld [vmem:[#allocation2] sm:$0xff]  ;;  %v492_v3 = vld [vmem:[#allocation2 + $0x8] sm:$0xff]  ;;  %4378 = vmatprep.subr.bf16.mxu0 %v4775_v17  ;;  %4382 = vmatprep.mubr.msk.bf16.mxu0 %vm4776_vm2, %v4775_v17  ;;  %vm626_vm7 = vcmask 64512   ;;  %s4778_s19 = smov 64   ;;  %s4779_s21 = smov 88   ;;  %vm751_vm8 = vcmask 1043456  }
  0x1a   : > { %v500_v4 = vsel %vm499_vm1, %v491_v2, 0.0  ;;  %v503_v5 = vsel %vm499_vm1, %v492_v3, 0.0  ;;  %4379 = vmatpush3.bf16.msra.mxu0 %v4547_v16  ;;  %4386 = vmatprep.subr.bf16.mxu1 %v4775_v17  ;;  %v3949_v37 = vld [vmem:[%s4905_s3] ss:$0 sm:$0xff]  ;;  %v3950_v41 = vld [vmem:[%s4905_s3 + $0x1] ss:$0 sm:$0xff] }
  0x1b   : > { %501 = vadd.xlane.f32.xlu0 %v500_v4  ;;  %4380 = vmatprep.subr.bf16.mxu0 %v4775_v17  ;;  %v3951_v46 = vld [vmem:[%s5434_s26] ss:$0 sm:$0xff]  ;;  %s4780_s24 = smov 120   ;;  %s4781_s25 = smov 56   ;;  %vm1529_vm9 = vcmask 130048   ;;  %vm1532_vm10 = vcmask 195584  }
  0x1c   : > { %4388 = vmatprep.mubr.msk.bf16.mxu1 %vm4776_vm2, %v4775_v17  ;;  %s4782_s27 = smov 80   ;;  %s4783_s28 = smov 112  }
  0x1d   : > { %s4784_s30 = smov 48   ;;  %s4785_s13 = smov 72  }
  0x1e   : > { %4381 = vmatpush3.bf16.msra.mxu0 %v4548_v18  ;;  %s4786_s12 = smov 104   ;;  %s4787_s14 = smov 40  }
  0x1f   : > { %504 = vadd.xlane.f32.xlu0 %v503_v5  ;;  %4392 = vmatprep.subr.bf16.mxu0 %v4775_v17  ;;  %s4788_s1 = smov 8   ;;  %s4789_s20 = smov 16  }
  0x20   : > { %s4790_s26 = smov 24   ;;  %p4146_p5 = scmp.ne.s32.totalorder %s4861_s18, 1 }
  0x21   : > { %vm3695_vm15 = vcmask (!%p4146_p5), 1041409   ;;  %vm3698_vm0 = vcmask (!%p4146_p5), 254976  }
  0xa8   : > { %v502_v6 = vpop.xlane.xlu0 %501 }
  0xa9   : > { %v507_v7 = vmul.f32 0.03125, %v502_v6 }
  0xab   : > { %v509_v8 = vsub.f32 %v491_v2, %v507_v7 }
  0xac   : > { %v505_v9 = vpop.xlane.xlu0 %504 }
  0xad   : > { %v508_v10 = vmul.f32 0.03125, %v505_v9  ;;  %v511_v11 = vmul.f32 %v509_v8, %v509_v8 }
  0xaf   : > { %v510_v12 = vsub.f32 %v492_v3, %v508_v10  ;;  %v513_v13 = vsel %vm499_vm1, %v511_v11, 0.0 }
  0xb0   : > { %514 = vadd.xlane.f32.xlu1 %v513_v13 }
  0xb1   : > { %v512_v14 = vmul.f32 %v510_v12, %v510_v12 }
  0xb3   : > { %v516_v15 = vsel %vm499_vm1, %v512_v14, 0.0 }
  0xb4   : > { %517 = vadd.xlane.f32.xlu1 %v516_v15 }
 0x13d   : > { %v515_v19 = vpop.xlane.xlu1 %514 }
 0x13e   : > { %v519_v20 = vmul.f32 0.032258064, %v515_v19 }
 0x140   : > { %4679 = vrsqrt.f32 %v519_v20  ;;  %vm523_vm3 = vcmp.eq.f32.partialorder %v519_v20, inf  ;;  %v526_v25 = vand.u32 2147483648, %v519_v20  ;;  %vm525_vm4 = vcmp.eq.f32.partialorder %v519_v20, 0.0 }
 0x141   : > { %v518_v21 = vpop.xlane.xlu1 %517 }
 0x142   : > { %v520_v22 = vmul.f32 0.032258064, %v518_v21 }
 0x144   : > { %4681 = vrsqrt.f32 %v520_v22  ;;  %vm530_vm5 = vcmp.eq.f32.partialorder %v520_v22, inf  ;;  %v533_v31 = vand.u32 2147483648, %v520_v22  ;;  %vm532_vm6 = vcmp.eq.f32.partialorder %v520_v22, 0.0 }
 0x14a   : > { %v4680_v23 = vpop.eup %4679 }
 0x14b   : > { %v522_v24 = vmul.f32 %v4680_v23, %v519_v20 }
 0x14d   : > { %v524_v26 = vsel %vm523_vm3, %v519_v20, %v522_v24 }
 0x14e   : > { %v4682_v27 = vpop.eup %4681  ;;  %v527_v28 = vsel %vm525_vm4, %v526_v25, %v524_v26 }
 0x14f   : > { %v535_v29 = vadd.f32 1e-06, %v527_v28  ;;  %v529_v30 = vmul.f32 %v4682_v27, %v520_v22 }
 0x151   : > { %4683 = vrcp.f32 %v535_v29  ;;  %v531_v32 = vsel %vm530_vm5, %v520_v22, %v529_v30 }
 0x152   : > { %v534_v33 = vsel %vm532_vm6, %v533_v31, %v531_v32 }
 0x153   : > { %v536_v34 = vadd.f32 1e-06, %v534_v33 }
 0x155   : > { %4685 = vrcp.f32 %v536_v34 }
 0x15b   : > { %v4684_v35 = vpop.eup %4683 }
 0x15c   : > { %v538_v36 = vmul.f32 %v4684_v35, %v509_v8 }
 0x15e   : > { %v545_v40 = vmul.f32 %v3949_v37, %v538_v36 }
 0x15f   : > { %v4686_v38 = vpop.eup %4685 }
 0x160   : > { %v540_v39 = vmul.f32 %v4686_v38, %v510_v12  ;;  %v551_v43 = vadd.f32 %v3950_v41, %v545_v40 }
 0x162   : > { %v546_v42 = vmul.f32 %v3949_v37, %v540_v39 }
 0x164   : > { %v552_v44 = vadd.f32 %v3950_v41, %v546_v42 }
 0x166   : > { %v553_v45 = vpack.c.bf16 %v552_v44, %v551_v43 }
 0x168   : > { %4383 = vmatmul.mubr.msk.bf16.vlgmr.msra.gmra.mrb[0].mxu0 %vm499_vm1, %v553_v45 }
 0x169   : > { %4394 = vmatprep.mubr.msk.bf16.mxu0 %vm4776_vm2, %v4775_v17 }
 0x23b   : > { %v614_v47 = vpop.f32.mrb[0].mxu0 }
 0x23c   : > { %v615_v48 = vadd.f32 %v3951_v46, %v614_v47  ;;  %v4384_v49 = vpop.f32.mrb[1].mxu0 }
 0x23d   : > { %v617_v50 = vpop.f32.mrb[2].mxu0 }
 0x23e   : > { %v4938_v51 = vpack.c.bf16 %v615_v48, %v615_v48  ;;  %v618_v52 = vadd.f32 %v3951_v46, %v617_v50  ;;  %v4385_v53 = vpop.f32.mrb[3].mxu0 }
 0x240   : > { %v4940_v54 = vpack.c.bf16 %v618_v52, %v618_v52  ;;  %624 = vrot.lane.b32.xlu0 %v4938_v51, %s4777_s16 }
 0x242   : > { %674 = vrot.lane.b32.xlu1 %v4940_v54, %s4777_s16 }
 0x2b2   : > { %v625_v55 = vpop.permute.xlu0 %624 }
 0x2b3   : > { %v631_v56 = vsel %vm626_vm7, %v625_v55, 0 }
 0x2b4   : > { %4387 = vmatpush3.bf16.xpose.msra.mxu1 %v631_v56  ;;  %v675_v57 = vpop.permute.xlu1 %674 }
 0x2b5   : > { %v680_v58 = vsel %vm626_vm7, %v675_v57, 0  ;;  %4398 = vmatprep.subr.bf16.mxu1 %v4775_v17 }
 0x2b6   : > { %4393 = vmatpush3.bf16.xpose.msra.mxu0 %v680_v58 }
 0x2b7   : > { %4404 = vmatprep.subr.bf16.mxu0 %v4775_v17 }
 0x2bb   : > { %4389 = vmatmul.mubr.msk.bf16.vlgmr.msra.gmra.mrb[0].mxu1 %vm626_vm7, %v4938_v51 }
 0x2bc   : > { %4400 = vmatprep.mubr.msk.bf16.mxu1 %vm4776_vm2, %v4775_v17 }
 0x2bd   : > { %4395 = vmatmul.mubr.msk.bf16.vlgmr.msra.gmra.mrb[4].mxu0 %vm626_vm7, %v4940_v54 }
 0x2be   : > { %4406 = vmatprep.mubr.msk.bf16.mxu0 %vm4776_vm2, %v4775_v17 }
 0x38e   : > { %v667_v59 = vpop.f32.mrb[0].mxu1 }
 0x38f   : > { %v4390_v60 = vpop.f32.mrb[1].mxu1  ;;  %v722_v61 = vsel %vm626_vm7, %v667_v59, -inf }
 0x390   : > { %v670_v62 = vpop.f32.mrb[2].mxu1  ;;  %723 = vmax.xlane.f32.xlu1 %v722_v61  ;;  %v716_v63 = vpop.f32.mrb[4].mxu0 }
 0x391   : > { %v4391_v0 = vpop.f32.mrb[3].mxu1  ;;  %v4396_v1 = vpop.f32.mrb[5].mxu0  ;;  %v725_v2 = vsel %vm626_vm7, %v716_v63, -inf }
 0x392   : > { %726 = vmax.xlane.f32.xlu0 %v725_v2  ;;  %v719_v3 = vpop.f32.mrb[6].mxu0 }
 0x393   : > { %v4397_v4 = vpop.f32.mrb[7].mxu0 }
 0x3a1   : > { %795 = vrot.lane.b32.xlu1 %v4940_v54, %s4778_s19 }
 0x3a5   : > { %845 = vrot.lane.b32.xlu1 %v4938_v51, %s4779_s21 }
 0x41d   : > { %v724_v5 = vpop.xlane.xlu1 %723 }
 0x41e   : > { %v728_v6 = vsub.f32 %v667_v59, %v724_v5 }
 0x41f   : > { %v727_v7 = vpop.xlane.xlu0 %726 }
 0x420   : > { %v730_v8 = vmul.f32 1.442695, %v728_v6  ;;  %v729_v9 = vsub.f32 %v716_v63, %v727_v7 }
 0x421   : > { %v796_v10 = vpop.permute.xlu1 %795 }
 0x422   : > { %4687 = vpow2.f32 %v730_v8  ;;  %v732_v11 = vmul.f32 1.442695, %v729_v9  ;;  %v801_v12 = vsel %vm751_vm8, %v796_v10, 0 }
 0x423   : > { %4405 = vmatpush3.bf16.msra.mxu0 %v801_v12 }
 0x424   : > { %4689 = vpow2.f32 %v732_v11  ;;  %4416 = vmatprep.subr.bf16.mxu0 %v4775_v17 }
 0x425   : > { %v846_v18 = vpop.permute.xlu1 %845 }
 0x426   : > { %v851_v29 = vsel %vm626_vm7, %v846_v18, 0 }
 0x42c   : > { %v4688_v13 = vpop.eup %4687 }
 0x42d   : > { %v734_v14 = vsel %vm626_vm7, %v4688_v13, 0.0 }
 0x42e   : > { %v4690_v15 = vpop.eup %4689  ;;  %735 = vadd.xlane.f32.xlu0 %v734_v14 }
 0x42f   : > { %v737_v16 = vsel %vm626_vm7, %v4690_v15, 0.0 }
 0x430   : > { %738 = vadd.xlane.f32.xlu1 %v737_v16 }
 0x441   : > { %895 = vrot.lane.b32.xlu1 %v4940_v54, %s4779_s21 }
 0x444   : > { %746 = vrot.lane.b32.xlu0 %v4938_v51, %s4778_s19 }
 0x445   : > { %893 = vrot.lane.b32.xlu1 %v4940_v54, %s4780_s24 }
 0x448   : > { %843 = vrot.lane.b32.xlu0 %v4938_v51, %s4780_s24 }
 0x4bb   : > { %v736_v19 = vpop.xlane.xlu0 %735 }
 0x4bc   : > { %4691 = vrcp.f32 %v736_v19 }
 0x4bd   : > { %v739_v20 = vpop.xlane.xlu1 %738 }
 0x4be   : > { %4693 = vrcp.f32 %v739_v20 }
 0x4bf   : > { %v747_v21 = vpop.permute.xlu0 %746 }
 0x4c0   : > { %v753_v22 = vsel %vm751_vm8, %v747_v21, 0 }
 0x4c1   : > { %4399 = vmatpush3.bf16.msra.mxu1 %v753_v22  ;;  %v896_v28 = vpop.permute.xlu1 %895 }
 0x4c2   : > { %4410 = vmatprep.subr.bf16.mxu1 %v4775_v17  ;;  %v901_v31 = vsel %vm626_vm7, %v896_v28, 0 }
 0x4c3   : > { %v844_v32 = vpop.permute.xlu0 %843 }
 0x4c5   : > { %v894_v33 = vpop.permute.xlu1 %893 }
 0x4c6   : > { %v4692_v23 = vpop.eup %4691 }
 0x4c7   : > { %v742_v24 = vmul.f32 %v4692_v23, %v4688_v13 }
 0x4c8   : > { %v4694_v25 = vpop.eup %4693 }
 0x4c9   : > { %v743_v26 = vmul.f32 %v4694_v25, %v4690_v15  ;;  %v744_v27 = vpack.c.bf16 %v742_v24, %v742_v24 }
 0x4cb   : > { %4401 = vmatmul.mubr.msk.bf16.vlgmr.msra.gmra.mrb[4].mxu1 %vm626_vm7, %v744_v27  ;;  %v745_v30 = vpack.c.bf16 %v743_v26, %v743_v26 }
 0x4cc   : > { %4411 = vmatpush3.bf16.xpose.msra.mxu1 %v851_v29  ;;  %4412 = vmatprep.mubr.msk.bf16.mxu1 %vm4776_vm2, %v4775_v17 }
 0x4cd   : > { %4407 = vmatmul.mubr.msk.bf16.vlgmr.msra.gmra.mrb[8].mxu0 %vm626_vm7, %v745_v30  ;;  %4422 = vmatprep.subr.bf16.mxu1 %v4775_v17 }
 0x4ce   : > { %4417 = vmatpush3.bf16.xpose.msra.mxu0 %v901_v31  ;;  %4418 = vmatprep.mubr.msk.bf16.mxu0 %vm4776_vm2, %v4775_v17 }
 0x4cf   : > { %4428 = vmatprep.subr.bf16.mxu0 %v4775_v17 }
 0x4d3   : > { %4413 = vmatmul.mubr.msk.bf16.vlgmr.msra.gmra.mrb[8].mxu1 %vm626_vm7, %v844_v32 }
 0x4d4   : > { %4424 = vmatprep.mubr.msk.bf16.mxu1 %vm4776_vm2, %v4775_v17 }
 0x4d5   : > { %4419 = vmatmul.mubr.msk.bf16.vlgmr.msra.gmra.mrb[12].mxu0 %vm626_vm7, %v894_v33 }
 0x4d6   : > { %4430 = vmatprep.mubr.msk.bf16.mxu0 %vm4776_vm2, %v4775_v17 }
 0x59e   : > { %v4986_v34 = vpop.f32.mrb[4].mxu1 }
 0x59f   : > { %v4402_v35 = vpop.f32.mrb[5].mxu1 }
 0x5a0   : > { %v792_v36 = vpop.f32.mrb[6].mxu1  ;;  %v4988_v37 = vpop.f32.mrb[8].mxu0 }
 0x5a1   : > { %v4403_v38 = vpop.f32.mrb[7].mxu1  ;;  %v4408_v39 = vpop.f32.mrb[9].mxu0 }
 0x5a2   : > { %v840_v40 = vpop.f32.mrb[10].mxu0 }
 0x5a3   : > { %v4409_v41 = vpop.f32.mrb[11].mxu0 }
 0x5a6   : > { %v887_v42 = vpop.f32.mrb[8].mxu1 }
 0x5a7   : > { %v4414_v43 = vpop.f32.mrb[9].mxu1  ;;  %v943_v44 = vsel %vm626_vm7, %v887_v42, -inf }
 0x5a8   : > { %944 = vmax.xlane.f32.xlu0 %v943_v44  ;;  %v890_v45 = vpop.f32.mrb[10].mxu1  ;;  %v937_v46 = vpop.f32.mrb[12].mxu0 }
 0x5a9   : > { %v4415_v47 = vpop.f32.mrb[11].mxu1  ;;  %v4420_v48 = vpop.f32.mrb[13].mxu0  ;;  %v946_v49 = vsel %vm626_vm7, %v937_v46, -inf }
 0x5aa   : > { %947 = vmax.xlane.f32.xlu1 %v946_v49  ;;  %v940_v50 = vpop.f32.mrb[14].mxu0 }
 0x5ab   : > { %v4421_v52 = vpop.f32.mrb[15].mxu0 }
 0x5bb   : > { %1015 = vrot.lane.b32.xlu1 %v4940_v54, %s4781_s25 }
 0x5bf   : > { %1065 = vrot.lane.b32.xlu1 %v4938_v51, %s4782_s27 }
 0x5c3   : > { %1115 = vrot.lane.b32.xlu1 %v4940_v54, %s4782_s27 }
 0x5c7   : > { %1113 = vrot.lane.b32.xlu1 %v4940_v54, %s4783_s28 }
 0x635   : > { %v945_v53 = vpop.xlane.xlu0 %944 }
 0x636   : > { %v949_v55 = vsub.f32 %v887_v42, %v945_v53 }
 0x637   : > { %v948_v56 = vpop.xlane.xlu1 %947 }
 0x638   : > { %v951_v57 = vmul.f32 1.442695, %v949_v55  ;;  %v950_v58 = vsub.f32 %v937_v46, %v948_v56 }
 0x63a   : > { %4695 = vpow2.f32 %v951_v57  ;;  %v953_v59 = vmul.f32 1.442695, %v950_v58 }
 0x63b   : > { %v1016_v60 = vpop.permute.xlu1 %1015 }
 0x63c   : > { %4697 = vpow2.f32 %v953_v59  ;;  %v1021_v61 = vsel %vm751_vm8, %v1016_v60, 0 }
 0x63d   : > { %4429 = vmatpush3.bf16.msra.mxu0 %v1021_v61 }
 0x63e   : > { %4440 = vmatprep.subr.bf16.mxu0 %v4775_v17 }
 0x63f   : > { %v1066_v7 = vpop.permute.xlu1 %1065 }
 0x640   : > { %v1071_v13 = vsel %vm626_vm7, %v1066_v7, 0 }
 0x643   : > { %v1116_v12 = vpop.permute.xlu1 %1115 }
 0x644   : > { %v4696_v62 = vpop.eup %4695  ;;  %v1121_v15 = vsel %vm626_vm7, %v1116_v12, 0 }
 0x645   : > { %v955_v63 = vsel %vm626_vm7, %v4696_v62, 0.0 }
 0x646   : > { %v4698_v0 = vpop.eup %4697  ;;  %956 = vadd.xlane.f32.xlu0 %v955_v63 }
 0x647   : > { %v958_v1 = vsel %vm626_vm7, %v4698_v0, 0.0  ;;  %v1114_v18 = vpop.permute.xlu1 %1113 }
 0x64a   : > { %959 = vadd.xlane.f32.xlu0 %v958_v1 }
 0x660   : > { %967 = vrot.lane.b32.xlu0 %v4938_v51, %s4781_s25 }
 0x664   : > { %1063 = vrot.lane.b32.xlu0 %v4938_v51, %s4783_s28 }
 0x6d3   : > { %v957_v2 = vpop.xlane.xlu0 %956 }
 0x6d4   : > { %4699 = vrcp.f32 %v957_v2 }
 0x6d7   : > { %v960_v3 = vpop.xlane.xlu0 %959 }
 0x6d8   : > { %4701 = vrcp.f32 %v960_v3 }
 0x6db   : > { %v968_v4 = vpop.permute.xlu0 %967 }
 0x6dc   : > { %v973_v5 = vsel %vm751_vm8, %v968_v4, 0 }
 0x6dd   : > { %4423 = vmatpush3.bf16.msra.mxu1 %v973_v5 }
 0x6de   : > { %v4700_v6 = vpop.eup %4699  ;;  %4434 = vmatprep.subr.bf16.mxu1 %v4775_v17 }
 0x6df   : > { %v963_v8 = vmul.f32 %v4700_v6, %v4696_v62  ;;  %v1064_v16 = vpop.permute.xlu0 %1063 }
 0x6e1   : > { %v965_v9 = vpack.c.bf16 %v963_v8, %v963_v8 }
 0x6e2   : > { %v4702_v10 = vpop.eup %4701 }
 0x6e3   : > { %v964_v11 = vmul.f32 %v4702_v10, %v4698_v0  ;;  %4425 = vmatmul.mubr.msk.bf16.vlgmr.msra.gmra.mrb[12].mxu1 %vm626_vm7, %v965_v9 }
 0x6e4   : > { %4436 = vmatprep.mubr.msk.bf16.mxu1 %vm4776_vm2, %v4775_v17 }
 0x6e5   : > { %v966_v14 = vpack.c.bf16 %v964_v11, %v964_v11 }
 0x6e6   : > { %4435 = vmatpush3.bf16.xpose.msra.mxu1 %v1071_v13 }
 0x6e7   : > { %4431 = vmatmul.mubr.msk.bf16.vlgmr.msra.gmra.mrb[16].mxu0 %vm626_vm7, %v966_v14  ;;  %4446 = vmatprep.subr.bf16.mxu1 %v4775_v17 }
 0x6e8   : > { %4441 = vmatpush3.bf16.xpose.msra.mxu0 %v1121_v15  ;;  %4442 = vmatprep.mubr.msk.bf16.mxu0 %vm4776_vm2, %v4775_v17 }
 0x6e9   : > { %4452 = vmatprep.subr.bf16.mxu0 %v4775_v17 }
 0x6ed   : > { %4437 = vmatmul.mubr.msk.bf16.vlgmr.msra.gmra.mrb[16].mxu1 %vm626_vm7, %v1064_v16 }
 0x6ee   : > { %4448 = vmatprep.mubr.msk.bf16.mxu1 %vm4776_vm2, %v4775_v17 }
 0x6ef   : > { %4443 = vmatmul.mubr.msk.bf16.vlgmr.msra.gmra.mrb[20].mxu0 %vm626_vm7, %v1114_v18 }
 0x6f0   : > { %4454 = vmatprep.mubr.msk.bf16.mxu0 %vm4776_vm2, %v4775_v17 }
 0x7b6   : > { %v5020_v19 = vpop.f32.mrb[12].mxu1 }
 0x7b7   : > { %v4426_v20 = vpop.f32.mrb[13].mxu1 }
 0x7b8   : > { %v1012_v21 = vpop.f32.mrb[14].mxu1 }
 0x7b9   : > { %v4427_v22 = vpop.f32.mrb[15].mxu1 }
 0x7ba   : > { %v5022_v23 = vpop.f32.mrb[16].mxu0 }
 0x7bb   : > { %v4532_v24 = vpack.i.bf16 %v5022_v23, %v5020_v19  ;;  %v4432_v25 = vpop.f32.mrb[17].mxu0 }
 0x7bc   : > { %v1060_v26 = vpop.f32.mrb[18].mxu0 }
 0x7bd   : > { %v4433_v27 = vpop.f32.mrb[19].mxu0 }
 0x7c0   : > { %v1107_v28 = vpop.f32.mrb[16].mxu1 }
 0x7c1   : > { %v4438_v29 = vpop.f32.mrb[17].mxu1  ;;  %v1163_v30 = vsel %vm626_vm7, %v1107_v28, -inf }
 0x7c2   : > { %1164 = vmax.xlane.f32.xlu0 %v1163_v30  ;;  %v1110_v31 = vpop.f32.mrb[18].mxu1  ;;  %v1157_v32 = vpop.f32.mrb[20].mxu0 }
 0x7c3   : > { %v4439_v33 = vpop.f32.mrb[19].mxu1  ;;  %v4444_v35 = vpop.f32.mrb[21].mxu0  ;;  %v1166_v36 = vsel %vm626_vm7, %v1157_v32, -inf }
 0x7c4   : > { %1167 = vmax.xlane.f32.xlu1 %v1166_v36  ;;  %v1160_v38 = vpop.f32.mrb[22].mxu0 }
 0x7c5   : > { %v4445_v39 = vpop.f32.mrb[23].mxu0 }
 0x7d5   : > { %1235 = vrot.lane.b32.xlu1 %v4940_v54, %s4784_s30 }
 0x7d9   : > { %1285 = vrot.lane.b32.xlu1 %v4938_v51, %s4785_s13 }
 0x7dd   : > { %1335 = vrot.lane.b32.xlu1 %v4940_v54, %s4785_s13 }
 0x7e1   : > { %1333 = vrot.lane.b32.xlu1 %v4940_v54, %s4786_s12 }
 0x84f   : > { %v1165_v40 = vpop.xlane.xlu0 %1164 }
 0x850   : > { %v1169_v41 = vsub.f32 %v1107_v28, %v1165_v40 }
 0x851   : > { %v1168_v42 = vpop.xlane.xlu1 %1167 }
 0x852   : > { %v1171_v43 = vmul.f32 1.442695, %v1169_v41  ;;  %v1170_v44 = vsub.f32 %v1157_v32, %v1168_v42 }
 0x854   : > { %4703 = vpow2.f32 %v1171_v43  ;;  %v1173_v45 = vmul.f32 1.442695, %v1170_v44 }
 0x855   : > { %v1236_v46 = vpop.permute.xlu1 %1235 }
 0x856   : > { %4705 = vpow2.f32 %v1173_v45  ;;  %v1241_v47 = vsel %vm751_vm8, %v1236_v46, 0 }
 0x857   : > { %4453 = vmatpush3.bf16.msra.mxu0 %v1241_v47 }
 0x858   : > { %4464 = vmatprep.subr.bf16.mxu0 %v4775_v17 }
 0x859   : > { %v1286_v59 = vpop.permute.xlu1 %1285 }
 0x85a   : > { %v1291_v1 = vsel %vm626_vm7, %v1286_v59, 0 }
 0x85d   : > { %v1336_v0 = vpop.permute.xlu1 %1335 }
 0x85e   : > { %v4704_v48 = vpop.eup %4703  ;;  %v1341_v3 = vsel %vm626_vm7, %v1336_v0, 0 }
 0x85f   : > { %v1175_v49 = vsel %vm626_vm7, %v4704_v48, 0.0 }
 0x860   : > { %v4706_v50 = vpop.eup %4705  ;;  %1176 = vadd.xlane.f32.xlu0 %v1175_v49  ;;  %v4550_v49 = vld [vmem:[%s4882_s29 + $0x8] sm:$0xff]  }
 0x861   : > { %v1178_v52 = vsel %vm626_vm7, %v4706_v50, 0.0  ;;  %v1334_v5 = vpop.permute.xlu1 %1333 }
 0x864   : > { %1179 = vadd.xlane.f32.xlu0 %v1178_v52 }
 0x87a   : > { %1187 = vrot.lane.b32.xlu0 %v4938_v51, %s4784_s30 }
 0x87e   : > { %1283 = vrot.lane.b32.xlu0 %v4938_v51, %s4786_s12 }
 0x8ed   : > { %v1177_v53 = vpop.xlane.xlu0 %1176 }
 0x8ee   : > { %4707 = vrcp.f32 %v1177_v53 }
 0x8f1   : > { %v1180_v55 = vpop.xlane.xlu0 %1179 }
 0x8f2   : > { %4709 = vrcp.f32 %v1180_v55 }
 0x8f5   : > { %v1188_v56 = vpop.permute.xlu0 %1187 }
 0x8f6   : > { %v1193_v57 = vsel %vm751_vm8, %v1188_v56, 0 }
 0x8f7   : > { %4447 = vmatpush3.bf16.msra.mxu1 %v1193_v57 }
 0x8f8   : > { %v4708_v58 = vpop.eup %4707  ;;  %4458 = vmatprep.subr.bf16.mxu1 %v4775_v17 }
 0x8f9   : > { %v1183_v60 = vmul.f32 %v4708_v58, %v4704_v48  ;;  %v1284_v4 = vpop.permute.xlu0 %1283  ;;  %v4549_v48 = vld [vmem:[%s4882_s29] sm:$0xff]  }
 0x8fb   : > { %v1185_v61 = vpack.c.bf16 %v1183_v60, %v1183_v60 }
 0x8fc   : > { %v4710_v62 = vpop.eup %4709 }
 0x8fd   : > { %v1184_v63 = vmul.f32 %v4710_v62, %v4706_v50  ;;  %4449 = vmatmul.mubr.msk.bf16.vlgmr.msra.gmra.mrb[20].mxu1 %vm626_vm7, %v1185_v61 }
 0x8fe   : > { %4460 = vmatprep.mubr.msk.bf16.mxu1 %vm4776_vm2, %v4775_v17 }
 0x8ff   : > { %v1186_v2 = vpack.c.bf16 %v1184_v63, %v1184_v63 }
 0x900   : > { %4459 = vmatpush3.bf16.xpose.msra.mxu1 %v1291_v1 }
 0x901   : > { %4455 = vmatmul.mubr.msk.bf16.vlgmr.msra.gmra.mrb[24].mxu0 %vm626_vm7, %v1186_v2  ;;  %4470 = vmatprep.subr.bf16.mxu1 %v4775_v17 }
 0x902   : > { %4465 = vmatpush3.bf16.xpose.msra.mxu0 %v1341_v3  ;;  %4466 = vmatprep.mubr.msk.bf16.mxu0 %vm4776_vm2, %v4775_v17 }
 0x903   : > { %4476 = vmatprep.subr.bf16.mxu0 %v4775_v17 }
 0x907   : > { %4461 = vmatmul.mubr.msk.bf16.vlgmr.msra.gmra.mrb[24].mxu1 %vm626_vm7, %v1284_v4 }
 0x908   : > { %4472 = vmatprep.mubr.msk.bf16.mxu1 %vm4776_vm2, %v4775_v17 }
 0x909   : > { %4467 = vmatmul.mubr.msk.bf16.vlgmr.msra.gmra.mrb[28].mxu0 %vm626_vm7, %v1334_v5 }
 0x90a   : > { %4478 = vmatprep.mubr.msk.bf16.mxu0 %vm4776_vm2, %v4775_v17 }
 0x9d0   : > { %v1229_v6 = vpop.f32.mrb[20].mxu1 }
 0x9d1   : > { %v4450_v7 = vpop.f32.mrb[21].mxu1 }
 0x9d2   : > { %v1232_v8 = vpop.f32.mrb[22].mxu1 }
 0x9d3   : > { %v4451_v9 = vpop.f32.mrb[23].mxu1 }
 0x9d4   : > { %v1277_v10 = vpop.f32.mrb[24].mxu0 }
 0x9d5   : > { %v4537_v11 = vpack.i.bf16 %v1277_v10, %v1229_v6  ;;  %v4456_v12 = vpop.f32.mrb[25].mxu0 }
 0x9d6   : > { %v1280_v13 = vpop.f32.mrb[26].mxu0  ;;  %v3971_v12 = vld [vmem:[%s4905_s3 + $0x4] ss:$0 sm:$0xff] }
 0x9d7   : > { %v4457_v14 = vpop.f32.mrb[27].mxu0 }
 0x9da   : > { %v1327_v15 = vpop.f32.mrb[24].mxu1 }
 0x9db   : > { %v4462_v16 = vpop.f32.mrb[25].mxu1  ;;  %v1383_v18 = vsel %vm626_vm7, %v1327_v15, -inf }
 0x9dc   : > { %1384 = vmax.xlane.f32.xlu0 %v1383_v18  ;;  %v1330_v20 = vpop.f32.mrb[26].mxu1  ;;  %v1377_v21 = vpop.f32.mrb[28].mxu0  ;;  %v4727_v18 = vld [vmem:[#allocation2] sm:$0xff] }
 0x9dd   : > { %v4463_v22 = vpop.f32.mrb[27].mxu1  ;;  %v4468_v25 = vpop.f32.mrb[29].mxu0  ;;  %v1386_v26 = vsel %vm626_vm7, %v1377_v21, -inf }
 0x9de   : > { %1387 = vmax.xlane.f32.xlu1 %v1386_v26  ;;  %v1380_v27 = vpop.f32.mrb[30].mxu0 }
 0x9df   : > { %v4469_v28 = vpop.f32.mrb[31].mxu0 }
 0x9ef   : > { %1455 = vrot.lane.b32.xlu1 %v4940_v54, %s4787_s14 }
 0x9f3   : > { %4533 = vrot.lane.b32.xlu1 %v4532_v24, %s4788_s1 }
 0x9f7   : > { %4538 = vrot.lane.b32.xlu1 %v4537_v11, %s4789_s20 }
 0xa69   : > { %v1385_v29 = vpop.xlane.xlu0 %1384 }
 0xa6a   : > { %v1389_v30 = vsub.f32 %v1327_v15, %v1385_v29 }
 0xa6b   : > { %v1388_v31 = vpop.xlane.xlu1 %1387 }
 0xa6c   : > { %v1391_v32 = vmul.f32 1.442695, %v1389_v30  ;;  %v1390_v33 = vsub.f32 %v1377_v21, %v1388_v31 }
 0xa6e   : > { %4711 = vpow2.f32 %v1391_v32  ;;  %v1393_v35 = vmul.f32 1.442695, %v1390_v33 }
 0xa6f   : > { %v1456_v36 = vpop.permute.xlu1 %1455 }
 0xa70   : > { %4713 = vpow2.f32 %v1393_v35  ;;  %v1461_v38 = vsel %vm751_vm8, %v1456_v36, 0 }
 0xa71   : > { %4477 = vmatpush3.bf16.msra.mxu0 %v1461_v38 }
 0xa73   : > { %v4534_v61 = vpop.permute.xlu1 %4533 }
 0xa74   : > { %v4536_v63 = vunpack.i.h.bf16 %v4534_v61  ;;  %v4535_v0 = vunpack.i.l.bf16 %v4534_v61 }
 0xa76   : > { %v1528_v3 = vsel %vm626_vm7, %v4988_v37, %v4536_v63  ;;  %v1527_v4 = vsel %vm626_vm7, %v4986_v34, %v4535_v0  ;;  %v4728_v34 = vld [vmem:[#allocation2 + $0x8] sm:$0xff] }
 0xa77   : > { %v4539_v62 = vpop.permute.xlu1 %4538 }
 0xa78   : > { %v4712_v54 = vpop.eup %4711  ;;  %v4541_v1 = vunpack.i.h.bf16 %v4539_v62 }
 0xa79   : > { %v1395_v39 = vsel %vm626_vm7, %v4712_v54, 0.0 }
 0xa7a   : > { %v4714_v40 = vpop.eup %4713  ;;  %1396 = vadd.xlane.f32.xlu0 %v1395_v39  ;;  %v1531_v8 = vsel %vm1529_vm9, %v1528_v3, %v4541_v1  ;;  %v1663_v39 = vld [vmem:[%s4889_s15 + $0x40] sm:$0xff] }
 0xa7b   : > { %v1398_v19 = vsel %vm626_vm7, %v4714_v40, 0.0 }
 0xa7e   : > { %1399 = vadd.xlane.f32.xlu0 %v1398_v19 }
 0xa94   : > { %1407 = vrot.lane.b32.xlu0 %v4938_v51, %s4787_s14 }
 0xb07   : > { %v1397_v23 = vpop.xlane.xlu0 %1396 }
 0xb08   : > { %4715 = vrcp.f32 %v1397_v23  ;;  %v1664_v23 = vld [vmem:[%s4889_s15 + $0x48] sm:$0xff] }
 0xb0b   : > { %v1400_v24 = vpop.xlane.xlu0 %1399 }
 0xb0c   : > { %4717 = vrcp.f32 %v1400_v24 }
 0xb0f   : > { %v1408_v41 = vpop.permute.xlu0 %1407 }
 0xb10   : > { %v1413_v42 = vsel %vm751_vm8, %v1408_v41, 0 }
 0xb11   : > { %4471 = vmatpush3.bf16.msra.mxu1 %v1413_v42 }
 0xb12   : > { %v4716_v43 = vpop.eup %4715  ;;  %4482 = vmatprep.subr.bf16.mxu1 %v4775_v17 }
 0xb13   : > { %v1403_v44 = vmul.f32 %v4716_v43, %v4712_v54  ;;  %v1655_v54 = vld [vmem:[%s4889_s15] sm:$0xff] }
 0xb14   : > { %v3978_v19 = vcombine.high %v1655_v54, %v1663_v39  ;;  %v3977_v24 = vcombine.low %v1655_v54, %v1663_v39  ;;  %v1671_v43 = vld [vmem:[%s4889_s15 + $0x80] sm:$0xff]  ;;  %v1668_v54 = vld [vmem:[%s4889_s15 + $0x68] sm:$0xff] }
 0xb15   : > { %v1405_v45 = vpack.c.bf16 %v1403_v44, %v1403_v44  ;;  %v1679_v44 = vld [vmem:[%s4889_s15 + $0xc0] sm:$0xff] }
 0xb16   : > { %v4718_v46 = vpop.eup %4717  ;;  %1934 = vmatprep.subr.bf16.mxu0 %v3978_v19 }
 0xb17   : > { %v1404_v47 = vmul.f32 %v4718_v46, %v4714_v40  ;;  %4473 = vmatmul.mubr.msk.bf16.vlgmr.msra.gmra.mrb[28].mxu1 %vm626_vm7, %v1405_v45  ;;  %v1656_v40 = vld [vmem:[%s4889_s15 + $0x8] sm:$0xff]  ;;  %v3993_v46 = vcombine.low %v1671_v43, %v1679_v44 }
 0xb18   : > { %4486 = vmatprep.mubr.msk.bf16.mxu1 %vm4776_vm2, %v4775_v17  ;;  %4483 = vmatpush3.bf16.msra.mxu1 %v4549_v48  ;;  %v3979_v41 = vcombine.low %v1656_v40, %v1664_v23  ;;  %v3980_v42 = vcombine.high %v1656_v40, %v1664_v23  ;;  %v1672_v45 = vld [vmem:[%s4889_s15 + $0x88] sm:$0xff]  ;;  %v4791_v48 = vmov 0   ;;  %v1675_v23 = vld [vmem:[%s4889_s15 + $0xa0] sm:$0xff]  ;;  %vm4793_vm2 = vmmov (!%p4146_p5), 0  }
 0xb19   : > { %v1406_v51 = vpack.c.bf16 %v1404_v47, %v1404_v47  ;;  %4484 = vmatprep.subr.bf16.mxu1 %v4775_v17  ;;  %v4540_v17 = vunpack.i.l.bf16 %v4539_v62  ;;  %v3994_v47 = vcombine.high %v1671_v43, %v1679_v44 }
 0xb1b   : > { %4479 = vmatmul.mubr.msk.bf16.vlgmr.msra.gmra.mrb[32].mxu0 %vm626_vm7, %v1406_v51  ;;  %v1530_v7 = vsel %vm1529_vm9, %v1527_v4, %v4540_v17  ;;  %v1680_v51 = vld [vmem:[%s4889_s15 + $0xc8] sm:$0xff] }
 0xb1c   : > { %4485 = vmatpush3.bf16.msra.mxu1 %v4550_v49  ;;  %1935 = vmatpush1.bf16.msra.mxu0 %v3977_v24  ;;  %v3995_v49 = vcombine.low %v1672_v45, %v1680_v51  ;;  %v1683_v24 = vld [vmem:[%s4889_s15 + $0xe0] sm:$0xff] }
 0xb1d   : > { %1977 = vmatprep.subr.bf16.mxu1 %v3980_v42  ;;  %1966 = vmatprep.mubr.bf16.mxu0 %v4791_v48  ;;  %v1684_v42 = vld [vmem:[%s4889_s15 + $0xe8] sm:$0xff] }
 0xb1e   : > { %1936 = vmatprep.subr.bf16.mxu0 %v3994_v47  ;;  %v1661_v47 = vld [vmem:[%s4889_s15 + $0x30] sm:$0xff] }
 0xb20   : > { %1937 = vmatpush1.bf16.msra.mxu0 %v3993_v46 }
 0xbea   : > { %v1449_v50 = vpop.f32.mrb[28].mxu1 }
 0xbeb   : > { %v4474_v52 = vpop.f32.mrb[29].mxu1 }
 0xbec   : > { %v1452_v53 = vpop.f32.mrb[30].mxu1  ;;  %v1657_v52 = vld [vmem:[%s4889_s15 + $0x10] sm:$0xff] }
 0xbed   : > { %v4475_v55 = vpop.f32.mrb[31].mxu1  ;;  %v1665_v53 = vld [vmem:[%s4889_s15 + $0x50] sm:$0xff] }
 0xbee   : > { %v1497_v56 = vpop.f32.mrb[32].mxu0  ;;  %v1658_v55 = vld [vmem:[%s4889_s15 + $0x18] sm:$0xff] }
 0xbef   : > { %v4542_v57 = vpack.i.bf16 %v1497_v56, %v1449_v50  ;;  %v4480_v58 = vpop.f32.mrb[33].mxu0  ;;  %v3996_v50 = vcombine.high %v1672_v45, %v1680_v51  ;;  %v3982_v56 = vcombine.high %v1657_v52, %v1665_v53  ;;  %v4002_v45 = vcombine.high %v1675_v23, %v1683_v24  ;;  %v1669_v51 = vld [vmem:[%s4889_s15 + $0x70] sm:$0xff] }
 0xbf0   : > { %v1500_v59 = vpop.f32.mrb[34].mxu0  ;;  %v3981_v58 = vcombine.low %v1657_v52, %v1665_v53  ;;  %v4001_v52 = vcombine.low %v1675_v23, %v1683_v24  ;;  %v5201_v24 = vld [vmem:[%s4899_s23 + $0x8] sm:$0xff] }
 0xbf1   : > { %4543 = vrot.lane.b32.xlu0 %v4542_v57, %s4790_s26  ;;  %v4481_v60 = vpop.f32.mrb[35].mxu0  ;;  %v1666_v57 = vld [vmem:[%s4889_s15 + $0x58] sm:$0xff]  ;;  %2020 = vmatprep.subr.bf16.mxu0 %v3982_v56 }
 0xbf2   : > { %v3983_v59 = vcombine.low %v1658_v55, %v1666_v57  ;;  %v3984_v60 = vcombine.high %v1658_v55, %v1666_v57  ;;  %v3990_v55 = vcombine.high %v1661_v47, %v1669_v51  ;;  %v1677_v57 = vld [vmem:[%s4889_s15 + $0xb0] sm:$0xff] }
 0xc63   : > { %v4544_v2 = vpop.permute.xlu0 %4543 }
 0xc64   : > { %v4546_v5 = vunpack.i.h.bf16 %v4544_v2  ;;  %v4545_v6 = vunpack.i.l.bf16 %v4544_v2 }
 0xc66   : > { %v1534_v9 = vsel %vm1532_vm10, %v1531_v8, %v4546_v5  ;;  %v1533_v10 = vsel %vm1532_vm10, %v1530_v7, %v4545_v6 }
 0xc67   : > { %v1535_v11 = vpack.c.bf16 %v1534_v9, %v1533_v10 }
 0xc69   : > { %4487 = vmatmul.mubr.msk.bf16.vlgmr.msra.gmra.mrb[32].mxu1 %vm499_vm1, %v1535_v11 }
 0xc6a   : > { %1978 = vmatpush1.bf16.msra.mxu1 %v3979_v41  ;;  %2009 = vmatprep.mubr.bf16.mxu1 %v4791_v48  ;;  %v1676_v41 = vld [vmem:[%s4889_s15 + $0xa8] sm:$0xff] }
 0xc6b   : > { %1979 = vmatprep.subr.bf16.mxu1 %v3996_v50  ;;  %v4004_v46 = vcombine.high %v1676_v41, %v1684_v42  ;;  %v1670_v50 = vld [vmem:[%s4889_s15 + $0x78] sm:$0xff]  ;;  %v4003_v53 = vcombine.low %v1676_v41, %v1684_v42 }
 0xc6e   : > { %1980 = vmatpush1.bf16.msra.mxu1 %v3995_v49  ;;  %v1662_v49 = vld [vmem:[%s4889_s15 + $0x38] sm:$0xff] }
 0xc6f   : > { %2063 = vmatprep.subr.bf16.mxu1 %v3984_v60  ;;  %v3992_v56 = vcombine.high %v1662_v49, %v1670_v50  ;;  %v1686_v60 = vld [vmem:[%s4889_s15 + $0xf8] sm:$0xff] }
 0xd3c   : > { %v1593_v13 = vpop.f32.mrb[32].mxu1 }
 0xd3d   : > { %v1594_v14 = vadd.f32 %v3971_v12, %v1593_v13  ;;  %v4488_v15 = vpop.f32.mrb[33].mxu1 }
 0xd3e   : > { %v1596_v16 = vpop.f32.mrb[34].mxu1 }
 0xd3f   : > { %v5081_v20 = vadd.f32 %v4727_v18, %v1594_v14  ;;  %v1597_v37 = vadd.f32 %v3971_v12, %v1596_v16  ;;  %v4489_v21 = vpop.f32.mrb[35].mxu1  ;;  %v3975_v14 = vld [vmem:[%s4905_s3 + $0x2] ss:$0 sm:$0xff] }
 0xd41   : > { %v5083_v22 = vadd.f32 %v4728_v34, %v1597_v37  ;;  %v1602_v25 = vsel %vm499_vm1, %v5081_v20, 0.0  ;;  %v3976_v37 = vld [vmem:[%s4905_s3 + $0x3] ss:$0 sm:$0xff]  ;;  %v1673_v34 = vld [vmem:[%s4889_s15 + $0x90] sm:$0xff] }
 0xd42   : > { %1603 = vadd.xlane.f32.xlu1 %v1602_v25  ;;  %v1681_v25 = vld [vmem:[%s4889_s15 + $0xd0] sm:$0xff] }
 0xd43   : > { %v1605_v26 = vsel %vm499_vm1, %v5083_v22, 0.0 }
 0xd44   : > { %1606 = vadd.xlane.f32.xlu0 %v1605_v26  ;;  %v1674_v26 = vld [vmem:[%s4889_s15 + $0x98] sm:$0xff] }
 0xdcf   : > { %v1604_v27 = vpop.xlane.xlu1 %1603 }
 0xdd0   : > { %v1608_v28 = vmul.f32 0.03125, %v1604_v27  ;;  %v1682_v27 = vld [vmem:[%s4889_s15 + $0xd8] sm:$0xff] }
 0xdd1   : > { %v1607_v29 = vpop.xlane.xlu0 %1606  ;;  %v3999_v39 = vcombine.low %v1674_v26, %v1682_v27 }
 0xdd2   : > { %v5090_v30 = vsub.f32 %v5081_v20, %v1608_v28  ;;  %v1609_v31 = vmul.f32 0.03125, %v1607_v29 }
 0xdd4   : > { %v5093_v32 = vsub.f32 %v5083_v22, %v1609_v31  ;;  %v1612_v33 = vmul.f32 %v5090_v30, %v5090_v30 }
 0xdd6   : > { %v1614_v35 = vsel %vm499_vm1, %v1612_v33, 0.0  ;;  %v1613_v36 = vmul.f32 %v5093_v32, %v5093_v32  ;;  %v4000_v33 = vcombine.high %v1674_v26, %v1682_v27  ;;  %v4572_v26 = vld [vmem:[%s4894_s22 + $0xe8] sm:$0xff]  }
 0xdd7   : > { %1615 = vadd.xlane.f32.xlu0 %v1614_v35  ;;  %v1659_v35 = vld [vmem:[%s4889_s15 + $0x20] sm:$0xff]  ;;  %v4573_v27 = vld [vmem:[%s4894_s22 + $0x28] sm:$0xff]  }
 0xdd8   : > { %v1617_v38 = vsel %vm499_vm1, %v1613_v36, 0.0  ;;  %v1667_v36 = vld [vmem:[%s4889_s15 + $0x60] sm:$0xff] }
 0xdd9   : > { %v3986_v40 = vcombine.high %v1659_v35, %v1667_v36  ;;  %v3985_v43 = vcombine.low %v1659_v35, %v1667_v36  ;;  %v4579_v35 = vld [vmem:[%s4894_s22 + $0x78] sm:$0xff]  }
 0xdda   : > { %v4580_v36 = vld [vmem:[%s4894_s22 + $0xf8] sm:$0xff]  }
 0xddb   : > { %1618 = vadd.xlane.f32.xlu0 %v1617_v38  ;;  %v1660_v38 = vld [vmem:[%s4889_s15 + $0x28] sm:$0xff] }
 0xddc   : > { %v3988_v19 = vcombine.high %v1660_v38, %v1668_v54  ;;  %v3987_v44 = vcombine.low %v1660_v38, %v1668_v54  ;;  %v4581_v38 = vld [vmem:[%s4894_s22 + $0x38] sm:$0xff]  }
 0xddd   : > { %v4582_v54 = vld [vmem:[%s4894_s22 + $0xb8] sm:$0xff]  }
 0xe64   : > { %v1616_v61 = vpop.xlane.xlu0 %1615 }
 0xe65   : > { %v1620_v62 = vmul.f32 0.032258064, %v1616_v61  ;;  %v3989_v61 = vcombine.low %v1661_v47, %v1669_v51 }
 0xe67   : > { %4719 = vrsqrt.f32 %v1620_v62  ;;  %vm1624_vm11 = vcmp.eq.f32.partialorder %v1620_v62, inf  ;;  %v1627_v2 = vand.u32 2147483648, %v1620_v62  ;;  %vm1626_vm12 = vcmp.eq.f32.partialorder %v1620_v62, 0.0 }
 0xe68   : > { %v1619_v63 = vpop.xlane.xlu0 %1618 }
 0xe69   : > { %v1621_v0 = vmul.f32 0.032258064, %v1619_v63 }
 0xe6b   : > { %4721 = vrsqrt.f32 %v1621_v0  ;;  %vm1631_vm13 = vcmp.eq.f32.partialorder %v1621_v0, inf  ;;  %v1634_v8 = vand.u32 2147483648, %v1621_v0  ;;  %vm1633_vm14 = vcmp.eq.f32.partialorder %v1621_v0, 0.0 }
 0xe71   : > { %v4720_v1 = vpop.eup %4719 }
 0xe72   : > { %v1623_v17 = vmul.f32 %v4720_v1, %v1620_v62 }
 0xe74   : > { %v1625_v3 = vsel %vm1624_vm11, %v1620_v62, %v1623_v17  ;;  %v3991_v62 = vcombine.low %v1662_v49, %v1670_v50 }
 0xe75   : > { %v4722_v4 = vpop.eup %4721  ;;  %v1628_v5 = vsel %vm1626_vm12, %v1627_v2, %v1625_v3  ;;  %v4551_v2 = vld [vmem:[%s4894_s22 + $0x40] sm:$0xff]  }
 0xe76   : > { %v1636_v6 = vadd.f32 1e-06, %v1628_v5  ;;  %v1630_v7 = vmul.f32 %v4722_v4, %v1621_v0  ;;  %v4552_v3 = vld [vmem:[%s4894_s22 + $0xc0] sm:$0xff]  }
 0xe77   : > { %v4553_v4 = vld [vmem:[%s4894_s22] sm:$0xff]  }
 0xe78   : > { %4723 = vrcp.f32 %v1636_v6  ;;  %v1632_v9 = vsel %vm1631_vm13, %v1621_v0, %v1630_v7  ;;  %v4554_v5 = vld [vmem:[%s4894_s22 + $0x80] sm:$0xff]   ;;  %v4555_v6 = vld [vmem:[%s4894_s22 + $0x48] sm:$0xff]  }
 0xe79   : > { %v1635_v10 = vsel %vm1633_vm14, %v1634_v8, %v1632_v9  ;;  %v4556_v7 = vld [vmem:[%s4894_s22 + $0xc8] sm:$0xff]   ;;  %v4559_v9 = vld [vmem:[%s4894_s22 + $0x50] sm:$0xff]  }
 0xe7a   : > { %v1637_v11 = vadd.f32 1e-06, %v1635_v10  ;;  %v4558_v8 = vld [vmem:[%s4894_s22 + $0x88] sm:$0xff]   ;;  %v4560_v10 = vld [vmem:[%s4894_s22 + $0xd0] sm:$0xff]  }
 0xe7c   : > { %4725 = vrcp.f32 %v1637_v11  ;;  %v4561_v11 = vld [vmem:[%s4894_s22 + $0x10] sm:$0xff]  }
 0xe82   : > { %v4724_v12 = vpop.eup %4723 }
 0xe83   : > { %v1639_v13 = vmul.f32 %v4724_v12, %v5090_v30  ;;  %v3998_v30 = vcombine.high %v1673_v34, %v1681_v25  ;;  %v4562_v12 = vld [vmem:[%s4894_s22 + $0x90] sm:$0xff]  }
 0xe85   : > { %v1646_v16 = vmul.f32 %v3975_v14, %v1639_v13  ;;  %v4563_v13 = vld [vmem:[%s4894_s22 + $0x58] sm:$0xff]  }
 0xe86   : > { %v4726_v15 = vpop.eup %4725 }
 0xe87   : > { %v1641_v18 = vmul.f32 %v4726_v15, %v5093_v32  ;;  %v1652_v28 = vadd.f32 %v3976_v37, %v1646_v16  ;;  %v3997_v32 = vcombine.low %v1673_v34, %v1681_v25  ;;  %v4565_v15 = vld [vmem:[%s4894_s22 + $0x18] sm:$0xff]   ;;  %v4570_v34 = vld [vmem:[%s4894_s22 + $0xa0] sm:$0xff]   ;;  %v4571_v25 = vld [vmem:[%s4894_s22 + $0x68] sm:$0xff]  }
 0xe88   : > { %v4566_v16 = vld [vmem:[%s4894_s22 + $0x98] sm:$0xff]  }
 0xe89   : > { %v1647_v21 = vmul.f32 %v3975_v14, %v1641_v18  ;;  %v4564_v14 = vld [vmem:[%s4894_s22 + $0xd8] sm:$0xff]   ;;  %v4567_v18 = vld [vmem:[%s4894_s22 + $0x60] sm:$0xff]  }
 0xe8b   : > { %v1653_v29 = vadd.f32 %v3976_v37, %v1647_v21  ;;  %v4568_v37 = vld [vmem:[%s4894_s22 + $0xe0] sm:$0xff]  }
 0xe8c   : > { %v4569_v21 = vld [vmem:[%s4894_s22 + $0x20] sm:$0xff]  }
 0xe8d   : > { %v5123_v31 = vpack.c.bf16 %v1653_v29, %v1652_v28  ;;  %v4574_v28 = vld [vmem:[%s4894_s22 + $0xa8] sm:$0xff]   ;;  %v4575_v29 = vld [vmem:[%s4894_s22 + $0x70] sm:$0xff]  }
 0xe8f   : > { %4009 = vmatmul.mubr.msk.bf16.vlgmr.msra.gmra.mrb[36].mxu0 %vm499_vm1, %v5123_v31  ;;  %4010 = vmatmul.mubr.msk.bf16.vlgmr.msra.gmra.mrb[36].mxu1 %vm499_vm1, %v5123_v31 }
 0xe90   : > { %2021 = vmatpush1.bf16.msra.mxu0 %v3981_v58  ;;  %2064 = vmatpush1.bf16.msra.mxu1 %v3983_v59  ;;  %v1685_v58 = vld [vmem:[%s4889_s15 + $0xf0] sm:$0xff]  ;;  %v1678_v59 = vld [vmem:[%s4889_s15 + $0xb8] sm:$0xff] }
 0xe91   : > { %2022 = vmatprep.subr.bf16.mxu0 %v3998_v30  ;;  %2065 = vmatprep.subr.bf16.mxu1 %v4000_v33  ;;  %v4006_v63 = vcombine.high %v1677_v57, %v1685_v58  ;;  %v4008_v0 = vcombine.high %v1678_v59, %v1686_v60  ;;  %v4005_v1 = vcombine.low %v1677_v57, %v1685_v58  ;;  %v4577_v30 = vld [vmem:[%s4894_s22 + $0x30] sm:$0xff]  }
 0xe92   : > { %2052 = vmatprep.mubr.bf16.mxu0 %v4791_v48  ;;  %2095 = vmatprep.mubr.bf16.mxu1 %v4791_v48  ;;  %v4007_v17 = vcombine.low %v1678_v59, %v1686_v60  ;;  %v4578_v33 = vld [vmem:[%s4894_s22 + $0xb0] sm:$0xff]  }
 0xe94   : > { %2023 = vmatpush1.bf16.msra.mxu0 %v3997_v32  ;;  %2066 = vmatpush1.bf16.msra.mxu1 %v3999_v39  ;;  %v4583_v32 = vld [vmem:[%s4894_s22 + $0x140] sm:$0xff]  }
 0xe95   : > { %2106 = vmatprep.subr.bf16.mxu0 %v3986_v40  ;;  %2149 = vmatprep.subr.bf16.mxu1 %v3988_v19  ;;  %v4584_v39 = vld [vmem:[%s4894_s22 + $0x1c0] sm:$0xff]   ;;  %v1691_v40 = vlaneseq }
 0xe97   : > { %4011 = vmatmul.mubr.msk.bf16.vlgmr.msra.gmra.mrb[40].mxu0 %vm499_vm1, %v5123_v31  ;;  %4012 = vmatmul.mubr.msk.bf16.vlgmr.msra.gmra.mrb[40].mxu1 %vm499_vm1, %v5123_v31  ;;  %v5197_v19 = vshrl.u32 %v1691_v40, 7 }
 0xe98   : > { %2107 = vmatpush1.bf16.msra.mxu0 %v3985_v43  ;;  %2150 = vmatpush1.bf16.msra.mxu1 %v3987_v44  ;;  %v1687_v44 = vld [vmem:[%s4899_s23] sm:$0xff] }
 0xe99   : > { %2108 = vmatprep.subr.bf16.mxu0 %v4002_v45  ;;  %2151 = vmatprep.subr.bf16.mxu1 %v4004_v46  ;;  %v1717_v23 = vsub.s32 6, %v5197_v19  ;;  %v1693_v42 = vsub.s32 0, %v5197_v19  ;;  %v1701_v43 = vsub.s32 2, %v5197_v19  ;;  %v1697_v45 = vsub.s32 1, %v5197_v19 }
 0xe9a   : > { %2138 = vmatprep.mubr.bf16.mxu0 %v4791_v48  ;;  %2181 = vmatprep.mubr.bf16.mxu1 %v4791_v48  ;;  %v1705_v46 = vsub.s32 3, %v5197_v19  ;;  %v1721_v57 = vsub.s32 7, %v5197_v19 }
 0xe9b   : > { %v5204_v41 = vrot.slane %v5201_v24, %v1717_v23  ;;  %v1694_v47 = vrot.slane %v1687_v44, %v1693_v42  ;;  %v1702_v51 = vrot.slane %v1687_v44, %v1701_v43  ;;  %v1698_v49 = vrot.slane %v1687_v44, %v1697_v45 }
 0xe9c   : > { %2109 = vmatpush1.bf16.msra.mxu0 %v4001_v52  ;;  %2152 = vmatpush1.bf16.msra.mxu1 %v4003_v53  ;;  %v1706_v50 = vrot.slane %v1687_v44, %v1705_v46  ;;  %v1709_v52 = vsub.s32 4, %v5197_v19 }
 0xe9d   : > { %2192 = vmatprep.subr.bf16.mxu0 %v3990_v55  ;;  %2235 = vmatprep.subr.bf16.mxu1 %v3992_v56  ;;  %v1713_v56 = vsub.s32 5, %v5197_v19 }
 0xe9f   : > { %4013 = vmatmul.mubr.msk.bf16.vlgmr.msra.gmra.mrb[44].mxu0 %vm499_vm1, %v5123_v31  ;;  %4014 = vmatmul.mubr.msk.bf16.vlgmr.msra.gmra.mrb[44].mxu1 %vm499_vm1, %v5123_v31 }
 0xea0   : > { %2193 = vmatpush1.bf16.msra.mxu0 %v3989_v61  ;;  %2236 = vmatpush1.bf16.msra.mxu1 %v3991_v62 }
 0xea1   : > { %2194 = vmatprep.subr.bf16.mxu0 %v4006_v63  ;;  %2237 = vmatprep.subr.bf16.mxu1 %v4008_v0 }
 0xea2   : > { %2224 = vmatprep.mubr.bf16.mxu0 %v4791_v48  ;;  %2267 = vmatprep.mubr.bf16.mxu1 %v4791_v48  ;;  %v4557_v48 = vld [vmem:[%s4894_s22 + $0x8] sm:$0xff]  }
 0xea4   : > { %2195 = vmatpush1.bf16.msra.mxu0 %v4005_v1  ;;  %2238 = vmatpush1.bf16.msra.mxu1 %v4007_v17 }
 0xea5   : > { %4199 = vmatprep.subr.bf16.mxu0 %v4551_v2  ;;  %4221 = vmatprep.subr.bf16.mxu1 %v4552_v3 }
 0xea7   : > { %4015 = vmatmul.mubr.msk.bf16.vlgmr.msra.gmra.mrb[48].mxu0 %vm499_vm1, %v5123_v31  ;;  %4016 = vmatmul.mubr.msk.bf16.vlgmr.msra.gmra.mrb[48].mxu1 %vm499_vm1, %v5123_v31  ;;  %v4576_v31 = vld [vmem:[%s4894_s22 + $0xf0] sm:$0xff]  }
 0xea8   : > { %4200 = vmatpush3.bf16.msra.mxu0 %v4553_v4  ;;  %4222 = vmatpush3.bf16.msra.mxu1 %v4554_v5  ;;  %v1710_v5 = vrot.slane %v1687_v44, %v1709_v52 }
 0xea9   : > { %4201 = vmatprep.subr.bf16.mxu0 %v4555_v6  ;;  %4223 = vmatprep.subr.bf16.mxu1 %v4556_v7  ;;  %v1718_v6 = vrot.slane %v1687_v44, %v1717_v23 }
 0xeac   : > { %4202 = vmatpush3.bf16.msra.mxu0 %v4557_v48  ;;  %4224 = vmatpush3.bf16.msra.mxu1 %v4558_v8  ;;  %v1714_v8 = vrot.slane %v1687_v44, %v1713_v56 }
 0xead   : > { %4203 = vmatprep.subr.bf16.mxu0 %v4559_v9  ;;  %4225 = vmatprep.subr.bf16.mxu1 %v4560_v10  ;;  %v1722_v9 = vrot.slane %v1687_v44, %v1721_v57  ;;  %v1734_v44 = vrot.slane %v5201_v24, %v1701_v43  ;;  %v1738_v43 = vrot.slane %v5201_v24, %v1705_v46 }
 0xeb0   : > { %4204 = vmatpush3.bf16.msra.mxu0 %v4561_v11  ;;  %4226 = vmatpush3.bf16.msra.mxu1 %v4562_v12 }
 0xeb1   : > { %4205 = vmatprep.subr.bf16.mxu0 %v4563_v13  ;;  %4227 = vmatprep.subr.bf16.mxu1 %v4564_v14 }
 0xeb4   : > { %4206 = vmatpush3.bf16.msra.mxu0 %v4565_v15  ;;  %4228 = vmatpush3.bf16.msra.mxu1 %v4566_v16 }
 0xeb5   : > { %4207 = vmatprep.subr.bf16.mxu0 %v4567_v18  ;;  %4229 = vmatprep.subr.bf16.mxu1 %v4568_v37 }
 0xeb8   : > { %4208 = vmatpush3.bf16.msra.mxu0 %v4569_v21  ;;  %4230 = vmatpush3.bf16.msra.mxu1 %v4570_v34 }
 0xeb9   : > { %4209 = vmatprep.subr.bf16.mxu0 %v4571_v25  ;;  %4231 = vmatprep.subr.bf16.mxu1 %v4572_v26 }
 0xebc   : > { %4210 = vmatpush3.bf16.msra.mxu0 %v4573_v27  ;;  %4232 = vmatpush3.bf16.msra.mxu1 %v4574_v28  ;;  %v4585_v28 = vld [vmem:[%s4894_s22 + $0x100] sm:$0xff]  }
 0xebd   : > { %4211 = vmatprep.subr.bf16.mxu0 %v4575_v29  ;;  %4233 = vmatprep.subr.bf16.mxu1 %v4576_v31  ;;  %v4586_v29 = vld [vmem:[%s4894_s22 + $0x180] sm:$0xff]  }
 0xec0   : > { %4212 = vmatpush3.bf16.msra.mxu0 %v4577_v30  ;;  %4234 = vmatpush3.bf16.msra.mxu1 %v4578_v33 }
 0xec1   : > { %4213 = vmatprep.subr.bf16.mxu0 %v4579_v35  ;;  %4235 = vmatprep.subr.bf16.mxu1 %v4580_v36  ;;  %v4587_v36 = vld [vmem:[%s4894_s22 + $0x148] sm:$0xff]  }
 0xec4   : > { %4214 = vmatpush3.bf16.msra.mxu0 %v4581_v38  ;;  %4236 = vmatpush3.bf16.msra.mxu1 %v4582_v54  ;;  %v4588_v38 = vld [vmem:[%s4894_s22 + $0x1c8] sm:$0xff]   ;;  %v1726_v54 = vrot.slane %v5201_v24, %v1693_v42  ;;  %v1730_v42 = vrot.slane %v5201_v24, %v1697_v45  ;;  %v4592_v45 = vld [vmem:[%s4894_s22 + $0x1d0] sm:$0xff]  }
 0xec5   : > { %4243 = vmatprep.subr.bf16.mxu0 %v4583_v32  ;;  %4265 = vmatprep.subr.bf16.mxu1 %v4584_v39 }
 0xf62   : > { %v1968_v53 = vpop.f32.mrb[36].mxu0  ;;  %v2011_v55 = vpop.f32.mrb[36].mxu1 }
 0xf63   : > { %v1969_v58 = vadd.f32 %v1968_v53, %v1694_v47  ;;  %v2012_v59 = vadd.f32 %v2011_v55, %v1702_v51  ;;  %v1970_v60 = vpop.f32.mrb[37].mxu0  ;;  %v2013_v61 = vpop.f32.mrb[37].mxu1 }
 0xf64   : > { %v1971_v62 = vadd.f32 %v1970_v60, %v1698_v49  ;;  %v2014_v63 = vadd.f32 %v2013_v61, %v1706_v50  ;;  %v1972_v0 = vpop.f32.mrb[38].mxu0  ;;  %v2015_v1 = vpop.f32.mrb[38].mxu1 }
 0xf65   : > { %v1973_v17 = vadd.f32 %v1972_v0, %v1694_v47  ;;  %v2016_v2 = vadd.f32 %v2015_v1, %v1702_v51  ;;  %v1974_v3 = vpop.f32.mrb[39].mxu0  ;;  %v2017_v4 = vpop.f32.mrb[39].mxu1  ;;  %v2278_v10 = vmax.f32 %v1969_v58, 0.0  ;;  %v2280_v11 = vmax.f32 %v2012_v59, 0.0  ;;  %v4589_v58 = vld [vmem:[%s4894_s22 + $0x108] sm:$0xff]   ;;  %v4591_v0 = vld [vmem:[%s4894_s22 + $0x150] sm:$0xff]  }
 0xf66   : > { %v1975_v7 = vadd.f32 %v1974_v3, %v1698_v49  ;;  %v2018_v48 = vadd.f32 %v2017_v4, %v1706_v50  ;;  %v2279_v14 = vmax.f32 %v1971_v62, 0.0  ;;  %v2281_v15 = vmax.f32 %v2014_v63, 0.0  ;;  %v4590_v59 = vld [vmem:[%s4894_s22 + $0x188] sm:$0xff]  }
 0xf67   : > { %v2294_v12 = vmax.f32 %v1973_v17, 0.0  ;;  %v2296_v13 = vmax.f32 %v2016_v2, 0.0 }
 0xf68   : > { %v2295_v16 = vmax.f32 %v1975_v7, 0.0  ;;  %v2297_v18 = vmax.f32 %v2018_v48, 0.0 }
 0xf69   : > { %v2310_v37 = vpack.c.bf16 %v2294_v12, %v2278_v10  ;;  %v2312_v21 = vpack.c.bf16 %v2296_v13, %v2280_v11 }
 0xf6a   : > { %v2311_v34 = vpack.c.bf16 %v2295_v16, %v2279_v14  ;;  %v2313_v25 = vpack.c.bf16 %v2297_v18, %v2281_v15  ;;  %v2054_v26 = vpop.f32.mrb[40].mxu0  ;;  %v2097_v27 = vpop.f32.mrb[40].mxu1  ;;  %v4595_v14 = vld [vmem:[%s4894_s22 + $0x158] sm:$0xff]  }
 0xf6b   : > { %v2055_v31 = vadd.f32 %v2054_v26, %v1710_v5  ;;  %v2098_v30 = vadd.f32 %v2097_v27, %v1718_v6  ;;  %v2056_v33 = vpop.f32.mrb[41].mxu0  ;;  %v2099_v35 = vpop.f32.mrb[41].mxu1  ;;  %v4596_v15 = vld [vmem:[%s4894_s22 + $0x1d8] sm:$0xff]  }
 0xf6c   : > { %v2057_v32 = vadd.f32 %v2056_v33, %v1714_v8  ;;  %v2100_v39 = vadd.f32 %v2099_v35, %v1722_v9  ;;  %v2058_v40 = vpop.f32.mrb[42].mxu0  ;;  %v2101_v23 = vpop.f32.mrb[42].mxu1  ;;  %3386 = vmatprep.mubr.bf16.mxu0 %v2311_v34  ;;  %3427 = vmatprep.mubr.bf16.mxu1 %v2313_v25  ;;  %v4597_v33 = vld [vmem:[%s4894_s22 + $0x118] sm:$0xff]  }
 0xf6d   : > { %v2059_v47 = vadd.f32 %v2058_v40, %v1710_v5  ;;  %v2102_v51 = vadd.f32 %v2101_v23, %v1718_v6  ;;  %v2060_v49 = vpop.f32.mrb[43].mxu0  ;;  %v2103_v50 = vpop.f32.mrb[43].mxu1  ;;  %3387 = vmatmul.mubr.bf16.vlgmr.msra.gmra.mrb[52].mxu0 %v2310_v37  ;;  %3428 = vmatmul.mubr.bf16.vlgmr.msra.gmra.mrb[52].mxu1 %v2312_v21  ;;  %v2282_v60 = vmax.f32 %v2055_v31, 0.0  ;;  %v2284_v61 = vmax.f32 %v2098_v30, 0.0  ;;  %v4598_v35 = vld [vmem:[%s4894_s22 + $0x198] sm:$0xff]  }
 0xf6e   : > { %v2061_v53 = vadd.f32 %v2060_v49, %v1714_v8  ;;  %v2104_v55 = vadd.f32 %v2103_v50, %v1722_v9  ;;  %4244 = vmatpush3.bf16.msra.mxu0 %v4585_v28  ;;  %4266 = vmatpush3.bf16.msra.mxu1 %v4586_v29  ;;  %v2283_v1 = vmax.f32 %v2057_v32, 0.0  ;;  %v2285_v17 = vmax.f32 %v2100_v39, 0.0  ;;  %v4593_v8 = vld [vmem:[%s4894_s22 + $0x110] sm:$0xff]  }
 0xf6f   : > { %v2298_v62 = vmax.f32 %v2059_v47, 0.0  ;;  %v2300_v63 = vmax.f32 %v2102_v51, 0.0  ;;  %4245 = vmatprep.subr.bf16.mxu0 %v4587_v36  ;;  %4267 = vmatprep.subr.bf16.mxu1 %v4588_v38  ;;  %v4594_v9 = vld [vmem:[%s4894_s22 + $0x190] sm:$0xff]   ;;  %v1742_v28 = vrot.slane %v5201_v24, %v1709_v52  ;;  %v1746_v29 = vrot.slane %v5201_v24, %v1713_v56  ;;  %v4599_v52 = vld [vmem:[%s4894_s22 + $0x160] sm:$0xff]  }
 0xf70   : > { %v2299_v2 = vmax.f32 %v2061_v53, 0.0  ;;  %v2301_v3 = vmax.f32 %v2104_v55, 0.0  ;;  %v1754_v36 = vrot.slane %v5201_v24, %v1721_v57  ;;  %v4600_v56 = vld [vmem:[%s4894_s22 + $0x1e0] sm:$0xff]  }
 0xf71   : > { %v5240_v4 = vpack.c.bf16 %v2298_v62, %v2282_v60  ;;  %v5242_v5 = vpack.c.bf16 %v2300_v63, %v2284_v61  ;;  %v4602_v53 = vld [vmem:[%s4894_s22 + $0x1a0] sm:$0xff]   ;;  %v4603_v60 = vld [vmem:[%s4894_s22 + $0x168] sm:$0xff]  }
 0xf72   : > { %v2315_v46 = vpack.c.bf16 %v2299_v2, %v2283_v1  ;;  %v2317_v6 = vpack.c.bf16 %v2301_v3, %v2285_v17  ;;  %4246 = vmatpush3.bf16.msra.mxu0 %v4589_v58  ;;  %4268 = vmatpush3.bf16.msra.mxu1 %v4590_v59  ;;  %v2140_v7 = vpop.f32.mrb[44].mxu0  ;;  %v2183_v48 = vpop.f32.mrb[44].mxu1  ;;  %v4604_v61 = vld [vmem:[%s4894_s22 + $0x1e8] sm:$0xff]  }
 0xf73   : > { %v2141_v10 = vadd.f32 %v2140_v7, %v1726_v54  ;;  %v2184_v11 = vadd.f32 %v2183_v48, %v1734_v44  ;;  %v2142_v12 = vpop.f32.mrb[45].mxu0  ;;  %v2185_v13 = vpop.f32.mrb[45].mxu1  ;;  %4247 = vmatprep.subr.bf16.mxu0 %v4591_v0  ;;  %4269 = vmatprep.subr.bf16.mxu1 %v4592_v45  ;;  %v4605_v7 = vld [vmem:[%s4894_s22 + $0x128] sm:$0xff]  }
 0xf74   : > { %v2143_v16 = vadd.f32 %v2142_v12, %v1730_v42  ;;  %v2186_v18 = vadd.f32 %v2185_v13, %v1738_v43  ;;  %v2144_v37 = vpop.f32.mrb[46].mxu0  ;;  %v2187_v21 = vpop.f32.mrb[46].mxu1  ;;  %3468 = vmatprep.mubr.bf16.mxu0 %v2315_v46  ;;  %3509 = vmatprep.mubr.bf16.mxu1 %v2317_v6  ;;  %v4606_v48 = vld [vmem:[%s4894_s22 + $0x1a8] sm:$0xff]   ;;  %v4607_v12 = vld [vmem:[%s4894_s22 + $0x170] sm:$0xff]  }
 0xf75   : > { %v2145_v34 = vadd.f32 %v2144_v37, %v1726_v54  ;;  %v2188_v25 = vadd.f32 %v2187_v21, %v1734_v44  ;;  %v2146_v26 = vpop.f32.mrb[47].mxu0  ;;  %v2189_v27 = vpop.f32.mrb[47].mxu1  ;;  %v2286_v38 = vmax.f32 %v2141_v10, 0.0  ;;  %v2288_v54 = vmax.f32 %v2184_v11, 0.0 }
 0xf76   : > { %v2147_v31 = vadd.f32 %v2146_v26, %v1730_v42  ;;  %v2190_v30 = vadd.f32 %v2189_v27, %v1738_v43  ;;  %4248 = vmatpush3.bf16.msra.mxu0 %v4593_v8  ;;  %4270 = vmatpush3.bf16.msra.mxu1 %v4594_v9  ;;  %v2287_v40 = vmax.f32 %v2143_v16, 0.0  ;;  %v2289_v23 = vmax.f32 %v2186_v18, 0.0  ;;  %v4601_v42 = vld [vmem:[%s4894_s22 + $0x120] sm:$0xff]   ;;  %v4610_v26 = vld [vmem:[%s4894_s22 + $0x1b0] sm:$0xff]   ;;  %v4611_v27 = vld [vmem:[%s4894_s22 + $0x178] sm:$0xff]  }
 0xf77   : > { %v2302_v32 = vmax.f32 %v2145_v34, 0.0  ;;  %v2304_v39 = vmax.f32 %v2188_v25, 0.0  ;;  %4249 = vmatprep.subr.bf16.mxu0 %v4595_v14  ;;  %4271 = vmatprep.subr.bf16.mxu1 %v4596_v15  ;;  %v4609_v25 = vld [vmem:[%s4894_s22 + $0x130] sm:$0xff]  }
 0xf78   : > { %v2303_v44 = vmax.f32 %v2147_v31, 0.0  ;;  %v2305_v47 = vmax.f32 %v2190_v30, 0.0  ;;  %v4614_v31 = vld [vmem:[%s4894_s22 + $0x1b8] sm:$0xff]   ;;  %v4615_v30 = vld [vmem:[%s4894_s22 + $0x240] sm:$0xff]  }
 0xf79   : > { %v5261_v51 = vpack.c.bf16 %v2302_v32, %v2286_v38  ;;  %v5263_v19 = vpack.c.bf16 %v2304_v39, %v2288_v54  ;;  %v4619_v38 = vld [vmem:[%s4894_s22 + $0x248] sm:$0xff]  }
 0xf7a   : > { %v5265_v24 = vpack.c.bf16 %v2303_v44, %v2287_v40  ;;  %v5267_v57 = vpack.c.bf16 %v2305_v47, %v2289_v23  ;;  %4250 = vmatpush3.bf16.msra.mxu0 %v4597_v33  ;;  %4272 = vmatpush3.bf16.msra.mxu1 %v4598_v35  ;;  %v2226_v49 = vpop.f32.mrb[48].mxu0  ;;  %v2269_v50 = vpop.f32.mrb[48].mxu1  ;;  %v4616_v33 = vld [vmem:[%s4894_s22 + $0x2c0] sm:$0xff]   ;;  %v4620_v54 = vld [vmem:[%s4894_s22 + $0x2c8] sm:$0xff]   ;;  %v4627_v40 = vld [vmem:[%s4894_s22 + $0x258] sm:$0xff]  }
 0xf7b   : > { %v2227_v55 = vadd.f32 %v2226_v49, %v1742_v28  ;;  %v2270_v58 = vadd.f32 %v2269_v50, %v5204_v41  ;;  %v2228_v59 = vpop.f32.mrb[49].mxu0  ;;  %v2271_v43 = vpop.f32.mrb[49].mxu1  ;;  %4251 = vmatprep.subr.bf16.mxu0 %v4599_v52  ;;  %4273 = vmatprep.subr.bf16.mxu1 %v4600_v56  ;;  %v4617_v35 = vld [vmem:[%s4894_s22 + $0x200] sm:$0xff]   ;;  %v4621_v32 = vld [vmem:[%s4894_s22 + $0x208] sm:$0xff]   ;;  %v4623_v52 = vld [vmem:[%s4894_s22 + $0x250] sm:$0xff]  }
 0xf7c   : > { %v2229_v62 = vadd.f32 %v2228_v59, %v1746_v29  ;;  %v2272_v63 = vadd.f32 %v2271_v43, %v1754_v36  ;;  %v2230_v0 = vpop.f32.mrb[50].mxu0  ;;  %v2273_v45 = vpop.f32.mrb[50].mxu1  ;;  %v4622_v39 = vld [vmem:[%s4894_s22 + $0x288] sm:$0xff]   ;;  %v4626_v56 = vld [vmem:[%s4894_s22 + $0x290] sm:$0xff]   ;;  %v4628_v23 = vld [vmem:[%s4894_s22 + $0x2d8] sm:$0xff]  }
 0xf7d   : > { %v2231_v1 = vadd.f32 %v2230_v0, %v1742_v28  ;;  %v2274_v17 = vadd.f32 %v2273_v45, %v5204_v41  ;;  %v2232_v2 = vpop.f32.mrb[51].mxu0  ;;  %v2275_v3 = vpop.f32.mrb[51].mxu1  ;;  %v2290_v8 = vmax.f32 %v2227_v55, 0.0  ;;  %v2292_v9 = vmax.f32 %v2270_v58, 0.0  ;;  %v4608_v41 = vld [vmem:[%s4894_s22 + $0x1f0] sm:$0xff]   ;;  %v4612_v28 = vld [vmem:[%s4894_s22 + $0x1f8] sm:$0xff]  }
 0xf7e   : > { %v2233_v46 = vadd.f32 %v2232_v2, %v1746_v29  ;;  %v2276_v6 = vadd.f32 %v2275_v3, %v1754_v36  ;;  %4252 = vmatpush3.bf16.msra.mxu0 %v4601_v42  ;;  %4274 = vmatpush3.bf16.msra.mxu1 %v4602_v53  ;;  %v2291_v13 = vmax.f32 %v2229_v62, 0.0  ;;  %v2293_v14 = vmax.f32 %v2272_v63, 0.0  ;;  %v4613_v29 = vld [vmem:[%s4894_s22 + $0x138] sm:$0xff]   ;;  %v4618_v36 = vld [vmem:[%s4894_s22 + $0x280] sm:$0xff]   ;;  %v4635_v42 = vld [vmem:[%s4894_s22 + $0x268] sm:$0xff]  }
 0xf7f   : > { %v2306_v10 = vmax.f32 %v2231_v1, 0.0  ;;  %v2308_v11 = vmax.f32 %v2274_v17, 0.0  ;;  %4253 = vmatprep.subr.bf16.mxu0 %v4603_v60  ;;  %4275 = vmatprep.subr.bf16.mxu1 %v4604_v61  ;;  %v4629_v44 = vld [vmem:[%s4894_s22 + $0x218] sm:$0xff]   ;;  %v4633_v49 = vld [vmem:[%s4894_s22 + $0x220] sm:$0xff]   ;;  %v4636_v53 = vld [vmem:[%s4894_s22 + $0x2e8] sm:$0xff]  }
 0xf80   : > { %v2307_v15 = vmax.f32 %v2233_v46, 0.0  ;;  %v2309_v16 = vmax.f32 %v2276_v6, 0.0  ;;  %v4630_v47 = vld [vmem:[%s4894_s22 + $0x298] sm:$0xff]   ;;  %v4634_v50 = vld [vmem:[%s4894_s22 + $0x2a0] sm:$0xff]   ;;  %v4637_v55 = vld [vmem:[%s4894_s22 + $0x228] sm:$0xff]  }
 0xf81   : > { %v5279_v18 = vpack.c.bf16 %v2306_v10, %v2290_v8  ;;  %v5281_v37 = vpack.c.bf16 %v2308_v11, %v2292_v9  ;;  %v4638_v58 = vld [vmem:[%s4894_s22 + $0x2a8] sm:$0xff]   ;;  %v4639_v59 = vld [vmem:[%s4894_s22 + $0x270] sm:$0xff]   ;;  %v4643_v62 = vld [vmem:[%s4894_s22 + $0x278] sm:$0xff]  }
 0xf82   : > { %v5283_v21 = vpack.c.bf16 %v2307_v15, %v2291_v13  ;;  %v5285_v34 = vpack.c.bf16 %v2309_v16, %v2293_v14  ;;  %4254 = vmatpush3.bf16.msra.mxu0 %v4605_v7  ;;  %4276 = vmatpush3.bf16.msra.mxu1 %v4606_v48  ;;  %v4640_v43 = vld [vmem:[%s4894_s22 + $0x2f0] sm:$0xff]   ;;  %v4644_v63 = vld [vmem:[%s4894_s22 + $0x2f8] sm:$0xff]   ;;  %v4647_v1 = vld [vmem:[%s4894_s22 + $0x340] sm:$0xff]  }
 0xf83   : > { %4255 = vmatprep.subr.bf16.mxu0 %v4607_v12  ;;  %4277 = vmatprep.subr.bf16.mxu1 %v4608_v41  ;;  %v4641_v60 = vld [vmem:[%s4894_s22 + $0x230] sm:$0xff]   ;;  %v4645_v0 = vld [vmem:[%s4894_s22 + $0x238] sm:$0xff]   ;;  %v4648_v17 = vld [vmem:[%s4894_s22 + $0x3c0] sm:$0xff]  }
 0xf84   : > { %v4642_v61 = vld [vmem:[%s4894_s22 + $0x2b0] sm:$0xff]   ;;  %v4646_v45 = vld [vmem:[%s4894_s22 + $0x2b8] sm:$0xff]   ;;  %v4649_v2 = vld [vmem:[%s4894_s22 + $0x300] sm:$0xff]  }
 0xf85   : > { %v4650_v3 = vld [vmem:[%s4894_s22 + $0x380] sm:$0xff]   ;;  %v4651_v46 = vld [vmem:[%s4894_s22 + $0x348] sm:$0xff]   ;;  %v4655_v8 = vld [vmem:[%s4894_s22 + $0x350] sm:$0xff]  }
 0xf86   : > { %4256 = vmatpush3.bf16.msra.mxu0 %v4609_v25  ;;  %4278 = vmatpush3.bf16.msra.mxu1 %v4610_v26  ;;  %v4652_v6 = vld [vmem:[%s4894_s22 + $0x3c8] sm:$0xff]   ;;  %v4658_v9 = vld [vmem:[%s4894_s22 + $0x390] sm:$0xff]   ;;  %v4659_v10 = vld [vmem:[%s4894_s22 + $0x358] sm:$0xff]  }
 0xf87   : > { %4257 = vmatprep.subr.bf16.mxu0 %v4611_v27  ;;  %4279 = vmatprep.subr.bf16.mxu1 %v4612_v28  ;;  %v4653_v7 = vld [vmem:[%s4894_s22 + $0x308] sm:$0xff]   ;;  %v4660_v11 = vld [vmem:[%s4894_s22 + $0x3d8] sm:$0xff]   ;;  %v4663_v13 = vld [vmem:[%s4894_s22 + $0x360] sm:$0xff]  }
 0xf88   : > { %v4654_v48 = vld [vmem:[%s4894_s22 + $0x388] sm:$0xff]   ;;  %v4661_v12 = vld [vmem:[%s4894_s22 + $0x318] sm:$0xff]   ;;  %v4664_v14 = vld [vmem:[%s4894_s22 + $0x3e0] sm:$0xff]  }
 0xf89   : > { %v4662_v41 = vld [vmem:[%s4894_s22 + $0x398] sm:$0xff]   ;;  %v4665_v15 = vld [vmem:[%s4894_s22 + $0x320] sm:$0xff]   ;;  %v4669_v25 = vld [vmem:[%s4894_s22 + $0x328] sm:$0xff]  }
 0xf8a   : > { %4258 = vmatpush3.bf16.msra.mxu0 %v4613_v29  ;;  %4280 = vmatpush3.bf16.msra.mxu1 %v4614_v31  ;;  %v4666_v16 = vld [vmem:[%s4894_s22 + $0x3a0] sm:$0xff]   ;;  %v4670_v26 = vld [vmem:[%s4894_s22 + $0x3a8] sm:$0xff]   ;;  %v4671_v27 = vld [vmem:[%s4894_s22 + $0x370] sm:$0xff]  }
 0xf8b   : > { %4287 = vmatprep.subr.bf16.mxu0 %v4615_v30  ;;  %4309 = vmatprep.subr.bf16.mxu1 %v4616_v33  ;;  %v4672_v28 = vld [vmem:[%s4894_s22 + $0x3f0] sm:$0xff]   ;;  %v4675_v30 = vld [vmem:[%s4894_s22 + $0x378] sm:$0xff]  }
 0xf8c   : > { %v4673_v29 = vld [vmem:[%s4894_s22 + $0x330] sm:$0xff]   ;;  %v4676_v33 = vld [vmem:[%s4894_s22 + $0x3f8] sm:$0xff]  }
 0xf8d   : > { %3469 = vmatmul.mubr.bf16.vlgmr.msra.gmra.mrb[56].mxu0 %v5240_v4  ;;  %3510 = vmatmul.mubr.bf16.vlgmr.msra.gmra.mrb[56].mxu1 %v5242_v5  ;;  %v4624_v4 = vld [vmem:[%s4894_s22 + $0x2d0] sm:$0xff]  }
 0xf8e   : > { %4288 = vmatpush3.bf16.msra.mxu0 %v4617_v35  ;;  %3550 = vmatprep.mubr.bf16.mxu0 %v5265_v24  ;;  %v4625_v5 = vld [vmem:[%s4894_s22 + $0x210] sm:$0xff]   ;;  %v4631_v24 = vld [vmem:[%s4894_s22 + $0x260] sm:$0xff]   ;;  %v4677_v35 = vld [vmem:[%s4894_s22 + $0x338] sm:$0xff]  }
 0xf8f   : > { %4310 = vmatpush3.bf16.msra.mxu1 %v4618_v36  ;;  %3591 = vmatprep.mubr.bf16.mxu1 %v5267_v57  ;;  %v4632_v57 = vld [vmem:[%s4894_s22 + $0x2e0] sm:$0xff]   ;;  %v4674_v31 = vld [vmem:[%s4894_s22 + $0x3b0] sm:$0xff]   ;;  %v4678_v36 = vld [vmem:[%s4894_s22 + $0x3b8] sm:$0xff]  }
 0xf90   : > { %4289 = vmatprep.subr.bf16.mxu0 %v4619_v38  ;;  %4311 = vmatprep.subr.bf16.mxu1 %v4620_v54 }
 0xf92   : > { %4290 = vmatpush3.bf16.msra.mxu0 %v4621_v32  ;;  %v4017_v32 = vld [vmem:[%s4905_s3 + $0x5] ss:$0 sm:$0xff] }
 0xf93   : > { %4312 = vmatpush3.bf16.msra.mxu1 %v4622_v39  ;;  %4291 = vmatprep.subr.bf16.mxu0 %v4623_v52 }
 0xf94   : > { %4313 = vmatprep.subr.bf16.mxu1 %v4624_v4 }
 0xf96   : > { %4292 = vmatpush3.bf16.msra.mxu0 %v4625_v5 }
 0xf97   : > { %4314 = vmatpush3.bf16.msra.mxu1 %v4626_v56  ;;  %4293 = vmatprep.subr.bf16.mxu0 %v4627_v40 }
 0xf98   : > { %4315 = vmatprep.subr.bf16.mxu1 %v4628_v23 }
 0xf9a   : > { %4294 = vmatpush3.bf16.msra.mxu0 %v4629_v44 }
 0xf9b   : > { %4316 = vmatpush3.bf16.msra.mxu1 %v4630_v47  ;;  %4295 = vmatprep.subr.bf16.mxu0 %v4631_v24 }
 0xf9c   : > { %4317 = vmatprep.subr.bf16.mxu1 %v4632_v57 }
 0xf9e   : > { %4296 = vmatpush3.bf16.msra.mxu0 %v4633_v49 }
 0xf9f   : > { %4318 = vmatpush3.bf16.msra.mxu1 %v4634_v50  ;;  %4297 = vmatprep.subr.bf16.mxu0 %v4635_v42 }
 0xfa0   : > { %4319 = vmatprep.subr.bf16.mxu1 %v4636_v53 }
 0xfa2   : > { %4298 = vmatpush3.bf16.msra.mxu0 %v4637_v55 }
 0xfa3   : > { %4320 = vmatpush3.bf16.msra.mxu1 %v4638_v58  ;;  %4299 = vmatprep.subr.bf16.mxu0 %v4639_v59 }
 0xfa4   : > { %4321 = vmatprep.subr.bf16.mxu1 %v4640_v43 }
 0xfa6   : > { %4300 = vmatpush3.bf16.msra.mxu0 %v4641_v60 }
 0xfa7   : > { %4322 = vmatpush3.bf16.msra.mxu1 %v4642_v61  ;;  %4301 = vmatprep.subr.bf16.mxu0 %v4643_v62 }
 0xfa8   : > { %4323 = vmatprep.subr.bf16.mxu1 %v4644_v63 }
 0xfaa   : > { %4302 = vmatpush3.bf16.msra.mxu0 %v4645_v0 }
 0xfab   : > { %4324 = vmatpush3.bf16.msra.mxu1 %v4646_v45  ;;  %4331 = vmatprep.subr.bf16.mxu0 %v4647_v1 }
 0xfac   : > { %4353 = vmatprep.subr.bf16.mxu1 %v4648_v17 }
 0xfad   : > { %3551 = vmatmul.mubr.bf16.vlgmr.msra.gmra.mrb[60].mxu0 %v5261_v51  ;;  %v4656_v51 = vld [vmem:[%s4894_s22 + $0x3d0] sm:$0xff]  }
 0xfae   : > { %3592 = vmatmul.mubr.bf16.vlgmr.msra.gmra.mrb[60].mxu1 %v5263_v19  ;;  %4332 = vmatpush3.bf16.msra.mxu0 %v4649_v2  ;;  %v4657_v19 = vld [vmem:[%s4894_s22 + $0x310] sm:$0xff]  }
 0xfaf   : > { %3632 = vmatprep.mubr.bf16.mxu0 %v5283_v21  ;;  %4354 = vmatpush3.bf16.msra.mxu1 %v4650_v3  ;;  %v4667_v21 = vld [vmem:[%s4894_s22 + $0x368] sm:$0xff]  }
 0xfb0   : > { %3673 = vmatprep.mubr.bf16.mxu1 %v5285_v34  ;;  %4333 = vmatprep.subr.bf16.mxu0 %v4651_v46  ;;  %v4668_v34 = vld [vmem:[%s4894_s22 + $0x3e8] sm:$0xff]  }
 0xfb1   : > { %4355 = vmatprep.subr.bf16.mxu1 %v4652_v6 }
 0xfb2   : > { %4334 = vmatpush3.bf16.msra.mxu0 %v4653_v7 }
 0xfb3   : > { %4356 = vmatpush3.bf16.msra.mxu1 %v4654_v48  ;;  %4335 = vmatprep.subr.bf16.mxu0 %v4655_v8 }
 0xfb4   : > { %4357 = vmatprep.subr.bf16.mxu1 %v4656_v51 }
 0xfb6   : > { %4336 = vmatpush3.bf16.msra.mxu0 %v4657_v19 }
 0xfb7   : > { %4358 = vmatpush3.bf16.msra.mxu1 %v4658_v9  ;;  %4337 = vmatprep.subr.bf16.mxu0 %v4659_v10 }
 0xfb8   : > { %4359 = vmatprep.subr.bf16.mxu1 %v4660_v11 }
 0xfba   : > { %4338 = vmatpush3.bf16.msra.mxu0 %v4661_v12 }
 0xfbb   : > { %4360 = vmatpush3.bf16.msra.mxu1 %v4662_v41  ;;  %4339 = vmatprep.subr.bf16.mxu0 %v4663_v13 }
 0xfbc   : > { %4361 = vmatprep.subr.bf16.mxu1 %v4664_v14 }
 0xfbe   : > { %4340 = vmatpush3.bf16.msra.mxu0 %v4665_v15 }
 0xfbf   : > { %4362 = vmatpush3.bf16.msra.mxu1 %v4666_v16  ;;  %4341 = vmatprep.subr.bf16.mxu0 %v4667_v21 }
 0xfc0   : > { %4363 = vmatprep.subr.bf16.mxu1 %v4668_v34 }
 0xfc2   : > { %4342 = vmatpush3.bf16.msra.mxu0 %v4669_v25 }
 0xfc3   : > { %4364 = vmatpush3.bf16.msra.mxu1 %v4670_v26  ;;  %4343 = vmatprep.subr.bf16.mxu0 %v4671_v27 }
 0xfc4   : > { %4365 = vmatprep.subr.bf16.mxu1 %v4672_v28 }
 0xfc6   : > { %4344 = vmatpush3.bf16.msra.mxu0 %v4673_v29 }
 0xfc7   : > { %4366 = vmatpush3.bf16.msra.mxu1 %v4674_v31  ;;  %4345 = vmatprep.subr.bf16.mxu0 %v4675_v30 }
 0xfc8   : > { %4367 = vmatprep.subr.bf16.mxu1 %v4676_v33 }
 0xfca   : > { %4346 = vmatpush3.bf16.msra.mxu0 %v4677_v35 }
 0xfcb   : > { %4368 = vmatpush3.bf16.msra.mxu1 %v4678_v36 }
 0xfcd   : > { %3633 = vmatmul.mubr.bf16.vlgmr.msra.gmra.mrb[64].mxu0 %v5279_v18 }
 0xfce   : > { %3674 = vmatmul.mubr.bf16.vlgmr.msra.gmra.mrb[64].mxu1 %v5281_v37 }
0x1040   : > { %v4215_v38 = vpop.f32.mrb[52].mxu0  ;;  %v4237_v54 = vpop.f32.mrb[52].mxu1 }
0x1041   : > { %v4216_v39 = vpop.f32.mrb[53].mxu0  ;;  %v4238_v52 = vpop.f32.mrb[53].mxu1 }
0x1042   : > { %v4217_v4 = vadd.f32 %v4216_v39, %v4215_v38  ;;  %v4239_v5 = vadd.f32 %v4238_v52, %v4237_v54  ;;  %v4218_v56 = vpop.f32.mrb[54].mxu0  ;;  %v4240_v40 = vpop.f32.mrb[54].mxu1 }
0x1043   : > { %v4219_v23 = vpop.f32.mrb[55].mxu0  ;;  %v4241_v44 = vpop.f32.mrb[55].mxu1 }
0x1044   : > { %v3389_v47 = vadd.f32 %v4217_v4, %v4017_v32  ;;  %v4220_v24 = vadd.f32 %v4219_v23, %v4218_v56  ;;  %v4242_v57 = vadd.f32 %v4241_v44, %v4240_v40 }
0x1046   : > { %v3430_v49 = vadd.f32 %v4239_v5, %v3389_v47  ;;  %v3392_v50 = vadd.f32 %v4220_v24, %v4017_v32 }
0x1048   : > { %v3433_v42 = vadd.f32 %v4242_v57, %v3392_v50 }
0x1060   : > { %v4259_v18 = vpop.f32.mrb[56].mxu0  ;;  %v4281_v53 = vpop.f32.mrb[56].mxu1 }
0x1061   : > { %v4260_v37 = vpop.f32.mrb[57].mxu0  ;;  %v4282_v55 = vpop.f32.mrb[57].mxu1 }
0x1062   : > { %v4261_v58 = vadd.f32 %v4260_v37, %v4259_v18  ;;  %v4283_v59 = vadd.f32 %v4282_v55, %v4281_v53  ;;  %v4262_v43 = vpop.f32.mrb[58].mxu0  ;;  %v4284_v60 = vpop.f32.mrb[58].mxu1  ;;  %v4792_v18 = vmov (!%p4146_p5), 0.0   ;;  %v4730_v53 = vld [vmem:[%s5427_s9 + $0x8] sm:$0xff] (!%p4146_p5)  }
0x1063   : > { %v4263_v61 = vpop.f32.mrb[59].mxu0  ;;  %v4285_v62 = vpop.f32.mrb[59].mxu1  ;;  %4490 = vmatprep.subr.bf16.mxu0 (!%p4146_p5), %v4792_v18  ;;  %4494 = vmatprep.mubr.msk.bf16.mxu0 (!%p4146_p5), %vm4793_vm2, %v4792_v18 }
0x1064   : > { %v3471_v63 = vadd.f32 %v4261_v58, %v3430_v49  ;;  %v4264_v0 = vadd.f32 %v4263_v61, %v4262_v43  ;;  %v4286_v45 = vadd.f32 %v4285_v62, %v4284_v60 }
0x1066   : > { %v3512_v1 = vadd.f32 %v4283_v59, %v3471_v63  ;;  %v3474_v17 = vadd.f32 %v4264_v0, %v3433_v42  ;;  %v4729_v42 = vld [vmem:[%s5427_s9] sm:$0xff] (!%p4146_p5)  }
0x1067   : > { %4491 = vmatpush3.bf16.msra.mxu0 (!%p4146_p5), %v4729_v42 }
0x1068   : > { %v3515_v2 = vadd.f32 %v4286_v45, %v3474_v17  ;;  %4492 = vmatprep.subr.bf16.mxu0 (!%p4146_p5), %v4792_v18  ;;  %v4147_v17 = vld [vmem:[%s5426_s8] ss:$0 sm:$0xff] (!%p4146_p5) }
0x106b   : > { %4493 = vmatpush3.bf16.msra.mxu0 (!%p4146_p5), %v4730_v53 }
0x1080   : > { %v4303_v3 = vpop.f32.mrb[60].mxu0 }
0x1081   : > { %v4325_v46 = vpop.f32.mrb[60].mxu1  ;;  %v4304_v6 = vpop.f32.mrb[61].mxu0 }
0x1082   : > { %v4305_v7 = vadd.f32 %v4304_v6, %v4303_v3  ;;  %v4326_v48 = vpop.f32.mrb[61].mxu1  ;;  %v4306_v8 = vpop.f32.mrb[62].mxu0 }
0x1083   : > { %v4327_v51 = vadd.f32 %v4326_v48, %v4325_v46  ;;  %v4328_v19 = vpop.f32.mrb[62].mxu1  ;;  %v4307_v9 = vpop.f32.mrb[63].mxu0  ;;  %v4148_v46 = vld [vmem:[%s5426_s8 + $0x1] ss:$0 sm:$0xff] (!%p4146_p5) }
0x1084   : > { %v3553_v10 = vadd.f32 %v4305_v7, %v3512_v1  ;;  %v4308_v11 = vadd.f32 %v4307_v9, %v4306_v8  ;;  %v4329_v12 = vpop.f32.mrb[63].mxu1 }
0x1085   : > { %v4330_v41 = vadd.f32 %v4329_v12, %v4328_v19 }
0x1086   : > { %v3594_v13 = vadd.f32 %v4327_v51, %v3553_v10  ;;  %v3556_v14 = vadd.f32 %v4308_v11, %v3515_v2  ;;  %v4149_v51 = vld [vmem:[%s5428_s10] ss:$0 sm:$0xff] (!%p4146_p5) }
0x1088   : > { %v3597_v15 = vadd.f32 %v4330_v41, %v3556_v14 }
0x10a0   : > { %v4347_v16 = vpop.f32.mrb[64].mxu0 }
0x10a1   : > { %v4369_v21 = vpop.f32.mrb[64].mxu1  ;;  %v4348_v34 = vpop.f32.mrb[65].mxu0 }
0x10a2   : > { %v4349_v25 = vadd.f32 %v4348_v34, %v4347_v16  ;;  %v4370_v26 = vpop.f32.mrb[65].mxu1  ;;  %v4350_v27 = vpop.f32.mrb[66].mxu0 }
0x10a3   : > { %v4371_v28 = vadd.f32 %v4370_v26, %v4369_v21  ;;  %v4372_v29 = vpop.f32.mrb[66].mxu1  ;;  %v4351_v31 = vpop.f32.mrb[67].mxu0 }
0x10a4   : > { %v3635_v30 = vadd.f32 %v4349_v25, %v3594_v13  ;;  %v4352_v33 = vadd.f32 %v4351_v31, %v4350_v27  ;;  %v4373_v35 = vpop.f32.mrb[67].mxu1 }
0x10a5   : > { %v4374_v36 = vadd.f32 %v4373_v35, %v4372_v29 }
0x10a6   : > { %v3676_v38 = vadd.f32 %v4371_v28, %v3635_v30  ;;  %v3638_v54 = vadd.f32 %v4352_v33, %v3597_v15  ;;  %3689 = sbr.rel (%p4146_p5) target bundleno = 4826 (0x12da), region = 72 }
0x10a8   : > { %v3682_v32 = vadd.f32 %v3676_v38, %v5081_v20  ;;  %v3679_v39 = vadd.f32 %v4374_v36, %v3638_v54 }
0x10aa   : > { %3684 = vst.msk [vmem:[#allocation2] sm:$0xff] %vm499_vm1, %v3682_v32  ;;  %v3683_v52 = vadd.f32 %v3679_v39, %v5083_v22 }
0x10ac   : > { %3685 = vst.msk [vmem:[#allocation2 + $0x8] sm:$0xff] %vm499_vm1, %v3683_v52  ;;  %v3694_v4 = vrot.slane (!%p4146_p5), %v3683_v52, 7 }
0x10ae   : > { %v3696_v5 = vsel %vm3695_vm15, %v3694_v4, %v3682_v32 }
0x10af   : > { %v3699_v56 = vsel %vm3698_vm0, %v3696_v5, 0.0 }
0x10b0   : > { %3700 = vadd.xlane.f32.xlu0 %v3699_v56 }
0x113d   : > { %v3701_v40 = vpop.xlane.xlu0 %3700 }
0x113e   : > { %v3702_v23 = vmul.f32 0.03125, %v3701_v40 }
0x1140   : > { %v3704_v20 = vrot.slane %v3702_v23, 1  ;;  %v3707_v44 = vsub.f32 %v3682_v32, %v3702_v23 }
0x1142   : > { %v3708_v47 = vsub.f32 %v3683_v52, %v3704_v20  ;;  %v3709_v57 = vmul.f32 %v3707_v44, %v3707_v44 }
0x1144   : > { %v3710_v24 = vmul.f32 %v3708_v47, %v3708_v47 }
0x1146   : > { %v3713_v22 = vrot.slane %v3710_v24, 7 }
0x1148   : > { %v3714_v49 = vsel %vm3695_vm15, %v3713_v22, %v3709_v57 }
0x1149   : > { %v3716_v50 = vsel %vm3698_vm0, %v3714_v49, 0.0 }
0x114a   : > { %3717 = vadd.xlane.f32.xlu0 %v3716_v50 }
0x11d7   : > { %v3718_v37 = vpop.xlane.xlu0 %3717 }
0x11d8   : > { %v3719_v55 = vmul.f32 0.032258064, %v3718_v37 }
0x11da   : > { %4731 = vrsqrt.f32 %v3719_v55  ;;  %vm3722_vm3 = vcmp.eq.f32.partialorder %v3719_v55, inf  ;;  %v3725_v43 = vand.u32 2147483648, %v3719_v55  ;;  %vm3724_vm4 = vcmp.eq.f32.partialorder %v3719_v55, 0.0 }
0x11e4   : > { %v4732_v58 = vpop.eup %4731 }
0x11e5   : > { %v3721_v59 = vmul.f32 %v4732_v58, %v3719_v55 }
0x11e7   : > { %v3723_v60 = vsel %vm3722_vm3, %v3719_v55, %v3721_v59 }
0x11e8   : > { %v3726_v61 = vsel %vm3724_vm4, %v3725_v43, %v3723_v60 }
0x11e9   : > { %v3727_v62 = vadd.f32 1e-06, %v3726_v61 }
0x11eb   : > { %v3729_v63 = vrot.slane %v3727_v62, 1  ;;  %4733 = vrcp.f32 %v3727_v62 }
0x11ed   : > { %4735 = vrcp.f32 %v3729_v63 }
0x11f5   : > { %v4734_v0 = vpop.eup %4733 }
0x11f6   : > { %v3733_v2 = vmul.f32 %v4734_v0, %v3707_v44 }
0x11f7   : > { %v4736_v45 = vpop.eup %4735 }
0x11f8   : > { %v3735_v1 = vmul.f32 %v4736_v45, %v3708_v47 }
0x11fa   : > { %v3742_v3 = vrot.slane %v3735_v1, 7 }
0x11fc   : > { %v3743_v6 = vsel %vm3695_vm15, %v3742_v3, %v3733_v2 }
0x11fd   : > { %v3745_v7 = vmul.f32 %v4147_v17, %v3743_v6 }
0x11ff   : > { %v3750_v48 = vadd.f32 %v4148_v46, %v3745_v7 }
0x1201   : > { %v3751_v8 = vpack.c.bf16 %v3750_v48, %v3750_v48 }
0x1203   : > { %4495 = vmatmul.mubr.msk.bf16.vlgmr.msra.gmra.mrb[0].mxu0 %vm499_vm1, %v3751_v8 }
0x12d6   : > { %v3812_v19 = vpop.f32.mrb[0].mxu0 }
0x12d7   : > { %v3813_v9 = vadd.f32 %v4149_v51, %v3812_v19  ;;  %v4496_v10 = vpop.f32.mrb[1].mxu0 }
0x12d8   : > { %v3815_v11 = vpop.f32.mrb[2].mxu0 }
0x12d9   : > { %3818 = vst [vmem:[#allocation3] sm:$0x3] %v3813_v9  ;;  %v4497_v12 = vpop.f32.mrb[3].mxu0 }
0x12da PF: > { %p4502_p6 = scmp.eq.s32.totalorder %s4861_s18, 1  ;;  %s4794_s27 = smov [#allocation3]  }
0x12db   : > { %s3826_s28 = sshll.u32 %s4794_s27, 4  ;;  %s3827_s28 = int_to_ptr.vmem [resolvable:$true] %s3826_s28 }
0x12dc   : > { %s4737_s30 = scalar_lea.vmem %s3827_s28, 32  ;;  %p4744_p10 = scmp.lt.s32.totalorder %s3827_s28, %s3827_s28 }
0x12dd   : > { %p4738_p7 = scmp.ne.s32.totalorder %s3827_s28, %s4737_s30  ;;  %p4745_p11 = scmp.lt.s32.totalorder %s4737_s30, %s4737_s30 }
0x12df   : > { %p4739_p8 = pnand %p4738_p7, %p4502_p6  ;;  %p4746_p12 = por %p4745_p11, %p4744_p10 }
0x12e1   : > { %p4740_p9 = pneg %p4739_p8 }
0x12e3   : > { %p4747_p13 = pnand %p4746_p12, %p4740_p9 }
0x12e5   : > { %4750 = shalt.err (!%p4747_p13)
}
0x12e6   : > { %s4751_s14 = scalar_lea.hbm %s5429_s11, 32 }
0x12e7   : > { %p4752_p0 = scmp.ne.s32.totalorder %s5429_s11, %s4751_s14  ;;  %p4757_p3 = scmp.lt.u32.totalorder %s4751_s14, %s5429_s11 }
0x12e9   : > { %p4753_p1 = pnand %p4752_p0, %p4502_p6 }
0x12eb   : > { %p4754_p2 = pneg %p4753_p1 }
0x12ed   : > { %p4759_p4 = pnand %p4757_p3, %p4754_p2 }
0x12ef   : > { %4762 = shalt.err (!%p4759_p4)
}
0x12f0   : > { %4499 = dma.vmem_to_hbm [thread:$0]  (%p4502_p6), %s3827_s28, 32, %s5429_s11, [#allocation4]  }
0x12f1   : > { %4768 = dma.done.wait (%p4502_p6), [#allocation4], 32  }
0x12f2   : > { %4770 = vsyncadd (%p4502_p6), [#allocation4], 4294967264 }
0x12f3 PF: > { %s22_s17 = sadd.s32 1, %s4773_s17  }
0x12f4   : > { %p19_p5 = scmp.ge.s32.totalorder %s22_s17, 4  }
0x12f6   :  { %21 = sbr.rel (!%p19_p5) target bundleno = 4 (0x4), region = 117 }
0x12fd   :  { %3839 = vsyncpa [#allocation4], 1 }
0x12fe   :  { %3841 = vsyncpa [#allocation4 + $0x1], 1 }

</bundles_post_ra>
